<compile_context>
chip_gen: v6e
topology: v6e:2x2x1
jax: 0.10.0
libtpu: 0.0.40
codegen_flags: <defaults>
</compile_context>

<pallas_src>
import jax
import jax.numpy as jnp
from jax.experimental import pallas as pl
from jax.experimental.pallas import tpu as pltpu

K = 3                 # knnPred.k
IN_FEAT = 2 + 4 * K   # 14 : [pos(2) | (npos(2), nval(2)) * K]
OUT_DIM = 2           # fc6: Linear(64, 2)
FEAT_PAD = 128        # lane-dense slab width for the knnFeat output / fc1 input
OUT_PAD = 128         # lane-dense slab width for the fc6 output
EPS = 1e-5            # BatchNorm1d eps
BIG = 3.0e38          # finite "never selected" score for padded measurement columns
MASKED = 1.0e30       # "already selected" score (must stay < BIG)


def _round_up(x, m):
    return ((x + m - 1) // m) * m


def rvnet_kernel(pos_ref, n2mT_ref, msq_ref, mpv_ref,
                 w1, w2, w3, w4, w5, w6,
                 t1, t2, t3, t4, t5, b6,
                 out_ref, feat_ref):
    pos = pos_ref[...]                       # (TB, 2)
    TB = pos.shape[0]
    Mp = msq_ref.shape[1]                    # lane-padded measurement count

    # ---- neighbor-selection score (monotone in true L2 distance, per row) ----
    # score = -2 * pos @ mpos.T + ||mpos||^2  ;  sqrt / ||pos||^2 dropped (dead work)
    score = (jnp.dot(pos, n2mT_ref[...], preferred_element_type=jnp.float32)
             + msq_ref[...])                 # (TB, Mp), padded cols >= BIG

    col = jax.lax.broadcasted_iota(jnp.int32, (TB, Mp), 1)
    mposval = mpv_ref[...]                   # (Mp, 4) = [mpos | mval]

    # ---- iterative top-K: first-min index per row, one fused gather matmul per k
    # TODO(synk): if M grows beyond a few thousand, tile Mp and carry a running
    # top-3 instead of materializing the full (TB, Mp) score matrix.
    neigh = []
    dwork = score
    for _ in range(K):
        minval = jnp.min(dwork, axis=1, keepdims=True)
        idx = jnp.min(jnp.where(dwork <= minval, col, Mp), axis=1, keepdims=True)
        sel = col == idx                                            # (TB, Mp) bool
        onehot = sel.astype(jnp.float32)
        neigh.append(jnp.dot(onehot, mposval,
                             preferred_element_type=jnp.float32))   # (TB, 4)
        dwork = jnp.where(sel, jnp.float32(MASKED), dwork)          # mask chosen col

    # ---- knn feature: build in registers, single lane-dense store ----
    knn = jnp.concatenate(
        [pos] + neigh + [jnp.zeros((TB, FEAT_PAD - IN_FEAT), jnp.float32)],
        axis=1)                                                     # (TB, 128)
    feat_ref[...] = knn

    # ---- MLP: relu(x @ W' + t) with BN scale pre-folded into W' ----
    def layer(x, w_ref, t_ref):
        return jnp.maximum(
            jnp.dot(x, w_ref[...], preferred_element_type=jnp.float32) + t_ref[...],
            0.0)

    x = layer(knn, w1, t1)       # 128(->14 real) -> 128
    x = layer(x, w2, t2)         # 128 -> 256
    x = layer(x, w3, t3)         # 256 -> 512
    x = layer(x, w4, t4)         # 512 -> 128
    # TODO(synk): nn.Dropout(p=0.5) is identity in eval mode; training RNG mask not implemented.
    x = layer(x, w5, t5)         # 128 -> 64
    # fc6 padded to 128 output lanes (cols >= 2 are zero) for an unmasked store.
    out_ref[...] = jnp.dot(x, w6[...], preferred_element_type=jnp.float32) + b6[...]


def local_rvnet(pos, mpos, mval, params, tb=512):
    B = pos.shape[0]
    M = mpos.shape[0]

    TB = _round_up(min(tb, _round_up(B, 8)), 8)          # row-block size (multiple of 8)
    Bp = pl.cdiv(B, TB) * TB
    pos_p = jnp.pad(pos, ((0, Bp - B), (0, 0)))

    # measurement-set constants, lane-padded & folded once in the wrapper
    Mp = max(128, _round_up(M, 128))
    mpos_p = jnp.pad(mpos, ((0, Mp - M), (0, 0)))
    mval_p = jnp.pad(mval, ((0, Mp - M), (0, 0)))
    neg2mposT = (-2.0 * mpos_p).T                              # (2, Mp)
    mpos_sq = jnp.sum(mpos_p * mpos_p, axis=1)[None, :]        # (1, Mp)
    mpos_sq = mpos_sq.at[:, M:].set(BIG)                       # padded cols never win
    mposval = jnp.concatenate([mpos_p, mval_p], axis=1)        # (Mp, 4)

    Ws = params["W"]
    ts = params["shift"]
    args = (pos_p, neg2mposT, mpos_sq, mposval,
            *Ws, *ts, params["b6"])

    row2_spec = pl.BlockSpec((TB, 2), lambda i: (i, 0))
    resident = lambda a: pl.BlockSpec(a.shape, lambda i: (0, 0))   # stays in VMEM
    in_specs = ([row2_spec,
                 resident(neg2mposT), resident(mpos_sq), resident(mposval)]
                + [resident(w) for w in Ws]
                + [resident(t) for t in ts]
                + [resident(params["b6"])])

    out, feat = pl.pallas_call(
        rvnet_kernel,
        out_shape=(jax.ShapeDtypeStruct((Bp, OUT_PAD), jnp.float32),
                   jax.ShapeDtypeStruct((Bp, FEAT_PAD), jnp.float32)),
        grid=(Bp // TB,),
        in_specs=in_specs,
        out_specs=(pl.BlockSpec((TB, OUT_PAD), lambda i: (i, 0)),
                   pl.BlockSpec((TB, FEAT_PAD), lambda i: (i, 0))),
        compiler_params=pltpu.CompilerParams(
            dimension_semantics=("parallel",)),
    )(*args)

    return out[:B, :OUT_DIM], feat[:B, :IN_FEAT]


def init_params(key):
    in_dims = [IN_FEAT, 128, 256, 512, 128, 64]
    out_dims = [128, 256, 512, 128, 64, OUT_DIM]
    Ws, bs = [], []
    for din, dout in zip(in_dims, out_dims):
        key, k1, k2 = jax.random.split(key, 3)
        Ws.append(0.1 * jax.random.normal(k1, (din, dout), jnp.float32))
        bs.append(0.05 * jax.random.normal(k2, (1, dout), jnp.float32))

    Wf, shifts = [], []
    for i in range(5):
        dout = out_dims[i]
        key, k1, k2, k3, k4 = jax.random.split(key, 5)
        gamma = 1.0 + 0.1 * jax.random.normal(k1, (1, dout), jnp.float32)
        beta = 0.1 * jax.random.normal(k2, (1, dout), jnp.float32)
        mean = 0.1 * jax.random.normal(k3, (1, dout), jnp.float32)
        var = 0.5 + 0.5 * jax.random.uniform(k4, (1, dout), jnp.float32)
        s = gamma / jnp.sqrt(var + EPS)           # BN (eval) scale
        Wf.append(Ws[i] * s)                      # fold scale into weight columns
        shifts.append((bs[i] - mean) * s + beta)  # fold linear bias + BN shift

    # pad fc1 input rows 14 -> 128 (kernel feeds a zero-padded 128-wide feature slab)
    W1p = jnp.zeros((FEAT_PAD, 128), jnp.float32).at[:IN_FEAT].set(Wf[0])
    Wf[0] = W1p
    # pad fc6 output columns 2 -> 128 for a lane-dense final store
    W6p = jnp.zeros((64, OUT_PAD), jnp.float32).at[:, :OUT_DIM].set(Ws[5])
    b6p = jnp.zeros((1, OUT_PAD), jnp.float32).at[:, :OUT_DIM].set(bs[5])

    return {"W": Wf + [W6p], "shift": shifts, "b6": b6p}


def reference(pos, mpos, mval, params):
    # plain-JAX reference mirroring the PyTorch forward (eval mode)
    d = jnp.linalg.norm(pos[:, None, :] - mpos[None, :, :], axis=-1)
    idx = jnp.argsort(d, axis=1)[:, :K]                              # (B, K)
    neigh = jnp.concatenate([mpos[idx], mval[idx]], axis=-1)         # (B, K, 4)
    knn = jnp.concatenate([pos, neigh.reshape(pos.shape[0], -1)], axis=1)
    Ws, ts = params["W"], params["shift"]
    x = jnp.maximum(knn @ Ws[0][:IN_FEAT] + ts[0], 0.0)
    for i in range(1, 5):
        x = jnp.maximum(x @ Ws[i] + ts[i], 0.0)
    out = x @ Ws[5][:, :OUT_DIM] + params["b6"][:, :OUT_DIM]
    return out, knn


if __name__ == "__main__":
    B, M = 8, 16
    key = jax.random.PRNGKey(0)
    kpos, kmpos, kmval, kparam = jax.random.split(key, 4)
    pos = jax.random.normal(kpos, (B, 2), jnp.float32)        # module input x: (batch, 2)
    mpos = jax.random.normal(kmpos, (M, 2), jnp.float32)      # measureSet keys (positions)
    mval = jax.random.normal(kmval, (M, 2), jnp.float32)      # measureSet values
    params = init_params(kparam)

    out, knn_feat = jax.block_until_ready(
        jax.jit(local_rvnet)(pos, mpos, mval, params))

    ref_out, ref_knn = reference(pos, mpos, mval, params)
    assert out.shape == (B, OUT_DIM) and knn_feat.shape == (B, IN_FEAT)
    assert jnp.allclose(knn_feat, ref_knn, atol=2e-3, rtol=2e-3), "knnFeat mismatch"
    assert jnp.allclose(out, ref_out, atol=2e-3, rtol=2e-3), "output mismatch"

    print("KERNEL_OK")
</pallas_src>

<mosaic_0001>
module attributes {stable_mosaic.version = 11 : i64} {
  func.func @rvnet_kernel(%arg0: i32, %arg1: memref<8x2xf32, #tpu.memory_space<vmem>>, %arg2: memref<2x128xf32, #tpu.memory_space<vmem>>, %arg3: memref<1x128xf32, #tpu.memory_space<vmem>>, %arg4: memref<128x4xf32, #tpu.memory_space<vmem>>, %arg5: memref<128x128xf32, #tpu.memory_space<vmem>>, %arg6: memref<128x256xf32, #tpu.memory_space<vmem>>, %arg7: memref<256x512xf32, #tpu.memory_space<vmem>>, %arg8: memref<512x128xf32, #tpu.memory_space<vmem>>, %arg9: memref<128x64xf32, #tpu.memory_space<vmem>>, %arg10: memref<64x128xf32, #tpu.memory_space<vmem>>, %arg11: memref<1x128xf32, #tpu.memory_space<vmem>>, %arg12: memref<1x256xf32, #tpu.memory_space<vmem>>, %arg13: memref<1x512xf32, #tpu.memory_space<vmem>>, %arg14: memref<1x128xf32, #tpu.memory_space<vmem>>, %arg15: memref<1x64xf32, #tpu.memory_space<vmem>>, %arg16: memref<1x128xf32, #tpu.memory_space<vmem>>, %arg17: memref<8x128xf32, #tpu.memory_space<vmem>>, %arg18: memref<8x128xf32, #tpu.memory_space<vmem>>) attributes {dimension_semantics = [#tpu.dimension_semantics<parallel>], iteration_bounds = array<i64: 1>, scalar_prefetch = 0 : i64, scratch_operands = 0 : i64, tpu.core_type = #tpu.core_type<tc>, window_params = [{transform_indices = @transform_0, window_bounds = array<i64: 8, 2>}, {pipeline_mode = #tpu.pipeline_mode<synchronous>, transform_indices = @transform_1, window_bounds = array<i64: 2, 128>}, {pipeline_mode = #tpu.pipeline_mode<synchronous>, transform_indices = @transform_2, window_bounds = array<i64: 1, 128>}, {pipeline_mode = #tpu.pipeline_mode<synchronous>, transform_indices = @transform_3, window_bounds = array<i64: 128, 4>}, {pipeline_mode = #tpu.pipeline_mode<synchronous>, transform_indices = @transform_4, window_bounds = array<i64: 128, 128>}, {pipeline_mode = #tpu.pipeline_mode<synchronous>, transform_indices = @transform_5, window_bounds = array<i64: 128, 256>}, {pipeline_mode = #tpu.pipeline_mode<synchronous>, transform_indices = @transform_6, window_bounds = array<i64: 256, 512>}, {pipeline_mode = #tpu.pipeline_mode<synchronous>, transform_indices = @transform_7, window_bounds = array<i64: 512, 128>}, {pipeline_mode = #tpu.pipeline_mode<synchronous>, transform_indices = @transform_8, window_bounds = array<i64: 128, 64>}, {pipeline_mode = #tpu.pipeline_mode<synchronous>, transform_indices = @transform_9, window_bounds = array<i64: 64, 128>}, {pipeline_mode = #tpu.pipeline_mode<synchronous>, transform_indices = @transform_10, window_bounds = array<i64: 1, 128>}, {pipeline_mode = #tpu.pipeline_mode<synchronous>, transform_indices = @transform_11, window_bounds = array<i64: 1, 256>}, {pipeline_mode = #tpu.pipeline_mode<synchronous>, transform_indices = @transform_12, window_bounds = array<i64: 1, 512>}, {pipeline_mode = #tpu.pipeline_mode<synchronous>, transform_indices = @transform_13, window_bounds = array<i64: 1, 128>}, {pipeline_mode = #tpu.pipeline_mode<synchronous>, transform_indices = @transform_14, window_bounds = array<i64: 1, 64>}, {pipeline_mode = #tpu.pipeline_mode<synchronous>, transform_indices = @transform_15, window_bounds = array<i64: 1, 128>}, {transform_indices = @transform_16, window_bounds = array<i64: 8, 128>}, {transform_indices = @transform_17, window_bounds = array<i64: 8, 128>}]} {
    %c0 = arith.constant 0 : index
    %c0_0 = arith.constant 0 : index
    %0 = vector.load %arg1[%c0, %c0_0] : memref<8x2xf32, #tpu.memory_space<vmem>>, vector<8x2xf32>
    %c0_1 = arith.constant 0 : index
    %c0_2 = arith.constant 0 : index
    %1 = vector.load %arg2[%c0_1, %c0_2] : memref<2x128xf32, #tpu.memory_space<vmem>>, vector<2x128xf32>
    %cst = arith.constant dense<0.000000e+00> : vector<8x128xf32>
    %2 = tpu.matmul %0, %1, %cst {dimension_numbers = #tpu.dot_dimension_numbers<[1], [0], [0], [1], [0, 0, 1, 1], [], []>} : vector<8x2xf32>, vector<2x128xf32>, vector<8x128xf32> -> vector<8x128xf32>
    %c0_3 = arith.constant 0 : index
    %c0_4 = arith.constant 0 : index
    %3 = vector.load %arg3[%c0_3, %c0_4] : memref<1x128xf32, #tpu.memory_space<vmem>>, vector<1x128xf32>
    %4 = vector.broadcast %3 : vector<1x128xf32> to vector<8x128xf32>
    %5 = arith.addf %2, %4 : vector<8x128xf32>
    %6 = tpu.iota {dimensions = array<i32: 1>} : vector<8x128xi32>
    %c0_5 = arith.constant 0 : index
    %c0_6 = arith.constant 0 : index
    %7 = vector.load %arg4[%c0_5, %c0_6] : memref<128x4xf32, #tpu.memory_space<vmem>>, vector<128x4xf32>
    %cst_7 = arith.constant dense<0x7F800000> : vector<8xf32>
    %8 = vector.multi_reduction <minimumf>, %5, %cst_7 [1] : vector<8x128xf32> to vector<8xf32>
    %9 = vector.shape_cast %8 : vector<8xf32> to vector<8x1xf32>
    %10 = vector.broadcast %9 : vector<8x1xf32> to vector<8x128xf32>
    %11 = arith.cmpf ole, %5, %10 : vector<8x128xf32>
    %c128_i32 = arith.constant 128 : i32
    %12 = vector.broadcast %c128_i32 : i32 to vector<8x128xi32>
    %13 = arith.select %11, %6, %12 : vector<8x128xi1>, vector<8x128xi32>
    %cst_8 = arith.constant dense<2147483647> : vector<8xi32>
    %14 = vector.multi_reduction <minsi>, %13, %cst_8 [1] : vector<8x128xi32> to vector<8xi32>
    %15 = vector.shape_cast %14 : vector<8xi32> to vector<8x1xi32>
    %16 = vector.broadcast %15 : vector<8x1xi32> to vector<8x128xi32>
    %17 = arith.cmpi eq, %6, %16 : vector<8x128xi32>
    %18 = arith.extui %17 : vector<8x128xi1> to vector<8x128xi32>
    %19 = arith.sitofp %18 : vector<8x128xi32> to vector<8x128xf32>
    %cst_9 = arith.constant dense<0.000000e+00> : vector<8x4xf32>
    %20 = tpu.matmul %19, %7, %cst_9 {dimension_numbers = #tpu.dot_dimension_numbers<[1], [0], [0], [1], [0, 0, 1, 1], [], []>} : vector<8x128xf32>, vector<128x4xf32>, vector<8x4xf32> -> vector<8x4xf32>
    %cst_10 = arith.constant 1.000000e+30 : f32
    %21 = vector.broadcast %cst_10 : f32 to vector<8x128xf32>
    %22 = arith.select %17, %21, %5 : vector<8x128xi1>, vector<8x128xf32>
    %cst_11 = arith.constant dense<0x7F800000> : vector<8xf32>
    %23 = vector.multi_reduction <minimumf>, %22, %cst_11 [1] : vector<8x128xf32> to vector<8xf32>
    %24 = vector.shape_cast %23 : vector<8xf32> to vector<8x1xf32>
    %25 = vector.broadcast %24 : vector<8x1xf32> to vector<8x128xf32>
    %26 = arith.cmpf ole, %22, %25 : vector<8x128xf32>
    %c128_i32_12 = arith.constant 128 : i32
    %27 = vector.broadcast %c128_i32_12 : i32 to vector<8x128xi32>
    %28 = arith.select %26, %6, %27 : vector<8x128xi1>, vector<8x128xi32>
    %cst_13 = arith.constant dense<2147483647> : vector<8xi32>
    %29 = vector.multi_reduction <minsi>, %28, %cst_13 [1] : vector<8x128xi32> to vector<8xi32>
    %30 = vector.shape_cast %29 : vector<8xi32> to vector<8x1xi32>
    %31 = vector.broadcast %30 : vector<8x1xi32> to vector<8x128xi32>
    %32 = arith.cmpi eq, %6, %31 : vector<8x128xi32>
    %33 = arith.extui %32 : vector<8x128xi1> to vector<8x128xi32>
    %34 = arith.sitofp %33 : vector<8x128xi32> to vector<8x128xf32>
    %cst_14 = arith.constant dense<0.000000e+00> : vector<8x4xf32>
    %35 = tpu.matmul %34, %7, %cst_14 {dimension_numbers = #tpu.dot_dimension_numbers<[1], [0], [0], [1], [0, 0, 1, 1], [], []>} : vector<8x128xf32>, vector<128x4xf32>, vector<8x4xf32> -> vector<8x4xf32>
    %cst_15 = arith.constant 1.000000e+30 : f32
    %36 = vector.broadcast %cst_15 : f32 to vector<8x128xf32>
    %37 = arith.select %32, %36, %22 : vector<8x128xi1>, vector<8x128xf32>
    %cst_16 = arith.constant dense<0x7F800000> : vector<8xf32>
    %38 = vector.multi_reduction <minimumf>, %37, %cst_16 [1] : vector<8x128xf32> to vector<8xf32>
    %39 = vector.shape_cast %38 : vector<8xf32> to vector<8x1xf32>
    %40 = vector.broadcast %39 : vector<8x1xf32> to vector<8x128xf32>
    %41 = arith.cmpf ole, %37, %40 : vector<8x128xf32>
    %c128_i32_17 = arith.constant 128 : i32
    %42 = vector.broadcast %c128_i32_17 : i32 to vector<8x128xi32>
    %43 = arith.select %41, %6, %42 : vector<8x128xi1>, vector<8x128xi32>
    %cst_18 = arith.constant dense<2147483647> : vector<8xi32>
    %44 = vector.multi_reduction <minsi>, %43, %cst_18 [1] : vector<8x128xi32> to vector<8xi32>
    %45 = vector.shape_cast %44 : vector<8xi32> to vector<8x1xi32>
    %46 = vector.broadcast %45 : vector<8x1xi32> to vector<8x128xi32>
    %47 = arith.cmpi eq, %6, %46 : vector<8x128xi32>
    %48 = arith.extui %47 : vector<8x128xi1> to vector<8x128xi32>
    %49 = arith.sitofp %48 : vector<8x128xi32> to vector<8x128xf32>
    %cst_19 = arith.constant dense<0.000000e+00> : vector<8x4xf32>
    %50 = tpu.matmul %49, %7, %cst_19 {dimension_numbers = #tpu.dot_dimension_numbers<[1], [0], [0], [1], [0, 0, 1, 1], [], []>} : vector<8x128xf32>, vector<128x4xf32>, vector<8x4xf32> -> vector<8x4xf32>
    %cst_20 = arith.constant 0.000000e+00 : f32
    %51 = vector.broadcast %cst_20 : f32 to vector<8x114xf32>
    %52 = tpu.concatenate %0, %20, %35, %50, %51 in 1 : vector<8x2xf32>, vector<8x4xf32>, vector<8x4xf32>, vector<8x4xf32>, vector<8x114xf32> -> vector<8x128xf32>
    %c0_21 = arith.constant 0 : index
    %c0_22 = arith.constant 0 : index
    %53 = vector.load %arg18[%c0_21, %c0_22] : memref<8x128xf32, #tpu.memory_space<vmem>>, vector<8x128xf32>
    tpu.vector_store %arg18[%c0_21, %c0_22], %52 {strides = array<i32>} : memref<8x128xf32, #tpu.memory_space<vmem>>, vector<8x128xf32>,
    %c0_23 = arith.constant 0 : index
    %c0_24 = arith.constant 0 : index
    %54 = vector.load %arg5[%c0_23, %c0_24] : memref<128x128xf32, #tpu.memory_space<vmem>>, vector<128x128xf32>
    %cst_25 = arith.constant dense<0.000000e+00> : vector<8x128xf32>
    %55 = tpu.matmul %52, %54, %cst_25 {dimension_numbers = #tpu.dot_dimension_numbers<[1], [0], [0], [1], [0, 0, 1, 1], [], []>} : vector<8x128xf32>, vector<128x128xf32>, vector<8x128xf32> -> vector<8x128xf32>
    %c0_26 = arith.constant 0 : index
    %c0_27 = arith.constant 0 : index
    %56 = vector.load %arg11[%c0_26, %c0_27] : memref<1x128xf32, #tpu.memory_space<vmem>>, vector<1x128xf32>
    %57 = vector.broadcast %56 : vector<1x128xf32> to vector<8x128xf32>
    %58 = arith.addf %55, %57 : vector<8x128xf32>
    %cst_28 = arith.constant 0.000000e+00 : f32
    %59 = vector.broadcast %cst_28 : f32 to vector<8x128xf32>
    %60 = arith.maximumf %58, %59 : vector<8x128xf32>
    %c0_29 = arith.constant 0 : index
    %c0_30 = arith.constant 0 : index
    %61 = vector.load %arg6[%c0_29, %c0_30] : memref<128x256xf32, #tpu.memory_space<vmem>>, vector<128x256xf32>
    %cst_31 = arith.constant dense<0.000000e+00> : vector<8x256xf32>
    %62 = tpu.matmul %60, %61, %cst_31 {dimension_numbers = #tpu.dot_dimension_numbers<[1], [0], [0], [1], [0, 0, 1, 1], [], []>} : vector<8x128xf32>, vector<128x256xf32>, vector<8x256xf32> -> vector<8x256xf32>
    %c0_32 = arith.constant 0 : index
    %c0_33 = arith.constant 0 : index
    %63 = vector.load %arg12[%c0_32, %c0_33] : memref<1x256xf32, #tpu.memory_space<vmem>>, vector<1x256xf32>
    %64 = vector.broadcast %63 : vector<1x256xf32> to vector<8x256xf32>
    %65 = arith.addf %62, %64 : vector<8x256xf32>
    %cst_34 = arith.constant 0.000000e+00 : f32
    %66 = vector.broadcast %cst_34 : f32 to vector<8x256xf32>
    %67 = arith.maximumf %65, %66 : vector<8x256xf32>
    %c0_35 = arith.constant 0 : index
    %c0_36 = arith.constant 0 : index
    %68 = vector.load %arg7[%c0_35, %c0_36] : memref<256x512xf32, #tpu.memory_space<vmem>>, vector<256x512xf32>
    %cst_37 = arith.constant dense<0.000000e+00> : vector<8x512xf32>
    %69 = tpu.matmul %67, %68, %cst_37 {dimension_numbers = #tpu.dot_dimension_numbers<[1], [0], [0], [1], [0, 0, 1, 1], [], []>} : vector<8x256xf32>, vector<256x512xf32>, vector<8x512xf32> -> vector<8x512xf32>
    %c0_38 = arith.constant 0 : index
    %c0_39 = arith.constant 0 : index
    %70 = vector.load %arg13[%c0_38, %c0_39] : memref<1x512xf32, #tpu.memory_space<vmem>>, vector<1x512xf32>
    %71 = vector.broadcast %70 : vector<1x512xf32> to vector<8x512xf32>
    %72 = arith.addf %69, %71 : vector<8x512xf32>
    %cst_40 = arith.constant 0.000000e+00 : f32
    %73 = vector.broadcast %cst_40 : f32 to vector<8x512xf32>
    %74 = arith.maximumf %72, %73 : vector<8x512xf32>
    %c0_41 = arith.constant 0 : index
    %c0_42 = arith.constant 0 : index
    %75 = vector.load %arg8[%c0_41, %c0_42] : memref<512x128xf32, #tpu.memory_space<vmem>>, vector<512x128xf32>
    %cst_43 = arith.constant dense<0.000000e+00> : vector<8x128xf32>
    %76 = tpu.matmul %74, %75, %cst_43 {dimension_numbers = #tpu.dot_dimension_numbers<[1], [0], [0], [1], [0, 0, 1, 1], [], []>} : vector<8x512xf32>, vector<512x128xf32>, vector<8x128xf32> -> vector<8x128xf32>
    %c0_44 = arith.constant 0 : index
    %c0_45 = arith.constant 0 : index
    %77 = vector.load %arg14[%c0_44, %c0_45] : memref<1x128xf32, #tpu.memory_space<vmem>>, vector<1x128xf32>
    %78 = vector.broadcast %77 : vector<1x128xf32> to vector<8x128xf32>
    %79 = arith.addf %76, %78 : vector<8x128xf32>
    %cst_46 = arith.constant 0.000000e+00 : f32
    %80 = vector.broadcast %cst_46 : f32 to vector<8x128xf32>
    %81 = arith.maximumf %79, %80 : vector<8x128xf32>
    %c0_47 = arith.constant 0 : index
    %c0_48 = arith.constant 0 : index
    %82 = vector.load %arg9[%c0_47, %c0_48] : memref<128x64xf32, #tpu.memory_space<vmem>>, vector<128x64xf32>
    %cst_49 = arith.constant dense<0.000000e+00> : vector<8x64xf32>
    %83 = tpu.matmul %81, %82, %cst_49 {dimension_numbers = #tpu.dot_dimension_numbers<[1], [0], [0], [1], [0, 0, 1, 1], [], []>} : vector<8x128xf32>, vector<128x64xf32>, vector<8x64xf32> -> vector<8x64xf32>
    %c0_50 = arith.constant 0 : index
    %c0_51 = arith.constant 0 : index
    %84 = vector.load %arg15[%c0_50, %c0_51] : memref<1x64xf32, #tpu.memory_space<vmem>>, vector<1x64xf32>
    %85 = vector.broadcast %84 : vector<1x64xf32> to vector<8x64xf32>
    %86 = arith.addf %83, %85 : vector<8x64xf32>
    %cst_52 = arith.constant 0.000000e+00 : f32
    %87 = vector.broadcast %cst_52 : f32 to vector<8x64xf32>
    %88 = arith.maximumf %86, %87 : vector<8x64xf32>
    %c0_53 = arith.constant 0 : index
    %c0_54 = arith.constant 0 : index
    %89 = vector.load %arg10[%c0_53, %c0_54] : memref<64x128xf32, #tpu.memory_space<vmem>>, vector<64x128xf32>
    %cst_55 = arith.constant dense<0.000000e+00> : vector<8x128xf32>
    %90 = tpu.matmul %88, %89, %cst_55 {dimension_numbers = #tpu.dot_dimension_numbers<[1], [0], [0], [1], [0, 0, 1, 1], [], []>} : vector<8x64xf32>, vector<64x128xf32>, vector<8x128xf32> -> vector<8x128xf32>
    %c0_56 = arith.constant 0 : index
    %c0_57 = arith.constant 0 : index
    %91 = vector.load %arg16[%c0_56, %c0_57] : memref<1x128xf32, #tpu.memory_space<vmem>>, vector<1x128xf32>
    %92 = vector.broadcast %91 : vector<1x128xf32> to vector<8x128xf32>
    %93 = arith.addf %90, %92 : vector<8x128xf32>
    %c0_58 = arith.constant 0 : index
    %c0_59 = arith.constant 0 : index
    %94 = vector.load %arg17[%c0_58, %c0_59] : memref<8x128xf32, #tpu.memory_space<vmem>>, vector<8x128xf32>
    tpu.vector_store %arg17[%c0_58, %c0_59], %93 {strides = array<i32>} : memref<8x128xf32, #tpu.memory_space<vmem>>, vector<8x128xf32>,
    return
  }
  func.func @transform_0(%arg0: i32) -> (i32, i32) {
    %c0_i32 = arith.constant 0 : i32
    %c0_i32_0 = arith.constant 0 : i32
    return %arg0, %c0_i32 : i32, i32
  }
  func.func @transform_1(%arg0: i32) -> (i32, i32) {
    %c0_i32 = arith.constant 0 : i32
    %c0_i32_0 = arith.constant 0 : i32
    %c0_i32_1 = arith.constant 0 : i32
    return %c0_i32, %c0_i32_0 : i32, i32
  }
  func.func @transform_2(%arg0: i32) -> (i32, i32) {
    %c0_i32 = arith.constant 0 : i32
    %c0_i32_0 = arith.constant 0 : i32
    %c0_i32_1 = arith.constant 0 : i32
    return %c0_i32, %c0_i32_0 : i32, i32
  }
  func.func @transform_3(%arg0: i32) -> (i32, i32) {
    %c0_i32 = arith.constant 0 : i32
    %c0_i32_0 = arith.constant 0 : i32
    %c0_i32_1 = arith.constant 0 : i32
    return %c0_i32, %c0_i32_0 : i32, i32
  }
  func.func @transform_4(%arg0: i32) -> (i32, i32) {
    %c0_i32 = arith.constant 0 : i32
    %c0_i32_0 = arith.constant 0 : i32
    %c0_i32_1 = arith.constant 0 : i32
    return %c0_i32, %c0_i32_0 : i32, i32
  }
  func.func @transform_5(%arg0: i32) -> (i32, i32) {
    %c0_i32 = arith.constant 0 : i32
    %c0_i32_0 = arith.constant 0 : i32
    %c0_i32_1 = arith.constant 0 : i32
    return %c0_i32, %c0_i32_0 : i32, i32
  }
  func.func @transform_6(%arg0: i32) -> (i32, i32) {
    %c0_i32 = arith.constant 0 : i32
    %c0_i32_0 = arith.constant 0 : i32
    %c0_i32_1 = arith.constant 0 : i32
    return %c0_i32, %c0_i32_0 : i32, i32
  }
  func.func @transform_7(%arg0: i32) -> (i32, i32) {
    %c0_i32 = arith.constant 0 : i32
    %c0_i32_0 = arith.constant 0 : i32
    %c0_i32_1 = arith.constant 0 : i32
    return %c0_i32, %c0_i32_0 : i32, i32
  }
  func.func @transform_8(%arg0: i32) -> (i32, i32) {
    %c0_i32 = arith.constant 0 : i32
    %c0_i32_0 = arith.constant 0 : i32
    %c0_i32_1 = arith.constant 0 : i32
    return %c0_i32, %c0_i32_0 : i32, i32
  }
  func.func @transform_9(%arg0: i32) -> (i32, i32) {
    %c0_i32 = arith.constant 0 : i32
    %c0_i32_0 = arith.constant 0 : i32
    %c0_i32_1 = arith.constant 0 : i32
    return %c0_i32, %c0_i32_0 : i32, i32
  }
  func.func @transform_10(%arg0: i32) -> (i32, i32) {
    %c0_i32 = arith.constant 0 : i32
    %c0_i32_0 = arith.constant 0 : i32
    %c0_i32_1 = arith.constant 0 : i32
    return %c0_i32, %c0_i32_0 : i32, i32
  }
  func.func @transform_11(%arg0: i32) -> (i32, i32) {
    %c0_i32 = arith.constant 0 : i32
    %c0_i32_0 = arith.constant 0 : i32
    %c0_i32_1 = arith.constant 0 : i32
    return %c0_i32, %c0_i32_0 : i32, i32
  }
  func.func @transform_12(%arg0: i32) -> (i32, i32) {
    %c0_i32 = arith.constant 0 : i32
    %c0_i32_0 = arith.constant 0 : i32
    %c0_i32_1 = arith.constant 0 : i32
    return %c0_i32, %c0_i32_0 : i32, i32
  }
  func.func @transform_13(%arg0: i32) -> (i32, i32) {
    %c0_i32 = arith.constant 0 : i32
    %c0_i32_0 = arith.constant 0 : i32
    %c0_i32_1 = arith.constant 0 : i32
    return %c0_i32, %c0_i32_0 : i32, i32
  }
  func.func @transform_14(%arg0: i32) -> (i32, i32) {
    %c0_i32 = arith.constant 0 : i32
    %c0_i32_0 = arith.constant 0 : i32
    %c0_i32_1 = arith.constant 0 : i32
    return %c0_i32, %c0_i32_0 : i32, i32
  }
  func.func @transform_15(%arg0: i32) -> (i32, i32) {
    %c0_i32 = arith.constant 0 : i32
    %c0_i32_0 = arith.constant 0 : i32
    %c0_i32_1 = arith.constant 0 : i32
    return %c0_i32, %c0_i32_0 : i32, i32
  }
  func.func @transform_16(%arg0: i32) -> (i32, i32) {
    %c0_i32 = arith.constant 0 : i32
    %c0_i32_0 = arith.constant 0 : i32
    return %arg0, %c0_i32 : i32, i32
  }
  func.func @transform_17(%arg0: i32) -> (i32, i32) {
    %c0_i32 = arith.constant 0 : i32
    %c0_i32_0 = arith.constant 0 : i32
    return %arg0, %c0_i32 : i32, i32
  }
}

</mosaic_0001>

<bundles_post_ra>
// kernel: local_rvnet.1
= control target key start
LH: loop header
LB: loop body
LE: loop exit
PB: predicated region body
PF: predicated region fallthrough
CT: control target
= control target key end

     0   :  { %s2495_s0 = inlined_call_operand.vmem [shape: f32[8,2], index: 0, kind: input, shape index: {}]   ;;  %s2496_s1 = inlined_call_operand.vmem [shape: f32[2,128], index: 1, kind: input, shape index: {}]   ;;  %s2497_s2 = inlined_call_operand.vmem [shape: f32[1,128], index: 2, kind: input, shape index: {}]   ;;  %s2498_s3 = inlined_call_operand.vmem [shape: f32[128,4], index: 3, kind: input, shape index: {}]   ;;  %s2499_s4 = inlined_call_operand.hbm [shape: f32[128,128], index: 4, kind: input, shape index: {}]   ;;  %s2500_s5 = inlined_call_operand.vmem [shape: f32[128,256], index: 5, kind: input, shape index: {}]   ;;  %s2501_s6 = inlined_call_operand.hbm [shape: f32[256,512], index: 6, kind: input, shape index: {}]   ;;  %s2502_s7 = inlined_call_operand.hbm [shape: f32[512,128], index: 7, kind: input, shape index: {}]   ;;  %s2503_s8 = inlined_call_operand.vmem [shape: f32[128,64], index: 8, kind: input, shape index: {}]   ;;  %s2504_s9 = inlined_call_operand.hbm [shape: f32[64,128], index: 9, kind: input, shape index: {}]   ;;  %s2505_s10 = inlined_call_operand.vmem [shape: f32[1,128], index: 10, kind: input, shape index: {}]   ;;  %s2506_s11 = inlined_call_operand.vmem [shape: f32[1,256], index: 11, kind: input, shape index: {}]   ;;  %s2507_s12 = inlined_call_operand.vmem [shape: f32[1,512], index: 12, kind: input, shape index: {}]   ;;  %s2508_s13 = inlined_call_operand.vmem [shape: f32[1,128], index: 13, kind: input, shape index: {}]   ;;  %s2509_s14 = inlined_call_operand.vmem [shape: f32[1,64], index: 14, kind: input, shape index: {}]   ;;  %s2510_s15 = inlined_call_operand.vmem [shape: f32[1,128], index: 15, kind: input, shape index: {}]   ;;  %s2511_s16 = inlined_call_operand.vmem [shape: f32[8,128], index: 16, kind: output, shape index: {0}]   ;;  %s2512_s17 = inlined_call_operand.hbm [shape: f32[8,128], index: 17, kind: output, shape index: {1}]  }
   0x1   :  { %2513 = sst [smem:[#allocation15_spill]] %s2495_s0 }
   0x2   :  { %2514 = sst [smem:[#allocation16_spill]] %s2496_s1 }
   0x3   :  { %23 = vsyncpa [#allocation3], 0 }
   0x4   :  { %24 = vsyncpa [#allocation6], 0 }
   0x5   :  { %25 = vsyncpa [#allocation9], 0 }
   0x6   :  { %26 = vsyncpa [#allocation4], 0  ;;  %s1938_s24 = smov [#allocation5]  }
   0x7   :  { %s54_s25 = sshll.u32 %s1938_s24, 4  ;;  %s55_s25 = int_to_ptr.vmem [resolvable:$true] %s54_s25 }
   0x8   :  { %s1838_s26 = scalar_lea.vmem %s55_s25, 16384  ;;  %p1843_p1 = scmp.lt.s32.totalorder %s55_s25, %s55_s25 }
   0x9   :  { %p1839_p0 = scmp.ne.s32.totalorder %s55_s25, %s1838_s26  ;;  %p1844_p2 = scmp.lt.s32.totalorder %s1838_s26, %s1838_s26 }
   0xb   :  { %p1845_p3 = por %p1844_p2, %p1843_p1 }
   0xd   :  { %p1846_p4 = pnand %p1845_p3, %p1839_p0 }
   0xf   :  { %1849 = shalt.err (!%p1846_p4)
}
  0x10   :  { %s1939_s27 = smov 512   ;;  %s1940_s28 = smov 32  }
  0x11   :  { %60 = dma.hbm_to_vmem [thread:$0]  %s2501_s6, 16384, %s55_s25, [#allocation6], %s1939_s27, %s1939_s27, %s1940_s28  }
  0x12   :  { %s1941_s30 = smov [#allocation2]  }
  0x13   :  { %s40_s18 = sshll.u32 %s1941_s30, 4  ;;  %s41_s18 = int_to_ptr.vmem [resolvable:$true] %s40_s18 }
  0x14   :  { %s1858_s19 = scalar_lea.vmem %s41_s18, 2048  ;;  %p1863_p6 = scmp.lt.s32.totalorder %s41_s18, %s41_s18 }
  0x15   :  { %p1859_p5 = scmp.ne.s32.totalorder %s41_s18, %s1858_s19  ;;  %p1864_p7 = scmp.lt.s32.totalorder %s1858_s19, %s1858_s19 }
  0x17   :  { %p1865_p8 = por %p1864_p7, %p1863_p6 }
  0x19   :  { %p1866_p9 = pnand %p1865_p8, %p1859_p5 }
  0x1b   :  { %1869 = shalt.err (!%p1866_p9)
}
  0x1c   :  { %s1942_s1 = smov 128   ;;  %s1943_s20 = smov 8  }
  0x1d   :  { %46 = dma.hbm_to_vmem [thread:$0]  %s2499_s4, 2048, %s41_s18, [#allocation3], %s1942_s1, %s1942_s1, %s1943_s20  }
  0x1e   :  { %s1944_s23 = smov [#allocation7]   ;;  %s1945_s26 = smov [#allocation8]  }
  0x1f   :  { %s66_s24 = sshll.u32 %s1944_s23, 4  ;;  %s80_s6 = sshll.u32 %s1945_s26, 4  ;;  %s67_s24 = int_to_ptr.vmem [resolvable:$true] %s66_s24  ;;  %s81_s6 = int_to_ptr.vmem [resolvable:$true] %s80_s6 }
  0x20   :  { %s1878_s25 = scalar_lea.vmem %s67_s24, 8192  ;;  %p1883_p11 = scmp.lt.s32.totalorder %s67_s24, %s67_s24 }
  0x21   :  { %p1879_p10 = scmp.ne.s32.totalorder %s67_s24, %s1878_s25  ;;  %p1884_p12 = scmp.lt.s32.totalorder %s1878_s25, %s1878_s25 }
  0x23   :  { %p1885_p13 = por %p1884_p12, %p1883_p11 }
  0x25   :  { %p1886_p0 = pnand %p1885_p13, %p1879_p10 }
  0x27   :  { %1889 = shalt.err (!%p1886_p0)
}
  0x28   :  { %72 = dma.hbm_to_vmem [thread:$0]  %s2502_s7, 8192, %s67_s24, [#allocation6], %s1942_s1, %s1942_s1, %s1943_s20  }
  0x29   :  { %s1898_s29 = scalar_lea.vmem %s81_s6, 1024  ;;  %p1903_p2 = scmp.lt.s32.totalorder %s81_s6, %s81_s6 }
  0x2a   :  { %p1899_p1 = scmp.ne.s32.totalorder %s81_s6, %s1898_s29  ;;  %p1904_p3 = scmp.lt.s32.totalorder %s1898_s29, %s1898_s29 }
  0x2c   :  { %p1905_p4 = por %p1904_p3, %p1903_p2 }
  0x2e   :  { %p1906_p5 = pnand %p1905_p4, %p1899_p1 }
  0x30   :  { %1909 = shalt.err (!%p1906_p5)
}
  0x31   :  { %86 = dma.hbm_to_vmem [thread:$0]  %s2504_s9, 1024, %s81_s6, [#allocation9], %s1942_s1, %s1942_s1, %s1943_s20  }
  0x32   :  { %1930 = dma.done.wait [#allocation3], 2048  }
  0x33   :  { %1931 = vsyncadd [#allocation3], 4294965248 }
  0x34   :  { %1932 = dma.done.wait [#allocation6], 24576  }
  0x35   :  { %1933 = vsyncadd [#allocation6], 4294942720 }
  0x36   :  { %1934 = dma.done.wait [#allocation9], 1024  }
  0x37   :  { %1935 = vsyncadd [#allocation9], 4294966272  ;;  %v1946_v0 = vmov 0.0   ;;  %vm1947_vm0 = vmmov 0   ;;  %vm124_vm1 = vcmask 1041408   ;;  %vm120_vm2 = vcmask 15360  }
  0x38   :  { %1616 = vmatprep.subr.mxu0 %v1946_v0  ;;  %1618 = vmatprep.mubr.msk.f32.mxu0 %vm1947_vm0, %v1946_v0  ;;  %s2515_s30 = sld [smem:[#allocation16_spill]]  ;;  %v1435_v3 = vld [vmem:[%s2497_s2] ss:$0 sm:$0xff]  ;;  %v198_v7 = vlaneseq  ;;  %v2094_v13 = vld [vmem:[%s2498_s3 + $0x78] sm:$0xff]  ;;  %v2099_v14 = vld [vmem:[%s2498_s3 + $0x70] sm:$0xff]  ;;  %v1948_v38 = vmov 1.0  }
  0x39   :  { %1621 = vmatprep.subr.mxu1 %v1946_v0  ;;  %1653 = vmatprep.mubr.msk.f32.mxu1 %vm1947_vm0, %v1946_v0  ;;  %s2516_s1 = sld [smem:[#allocation15_spill]]  ;;  %v2107_v15 = vld [vmem:[%s2498_s3 + $0x68] sm:$0xff]  ;;  %v2116_v16 = vld [vmem:[%s2498_s3 + $0x60] sm:$0xff]  ;;  %v2125_v17 = vld [vmem:[%s2498_s3 + $0x58] sm:$0xff]  ;;  %s1950_s7 = smov 6   ;;  %vm504_vm12 = vcmask 48128  }
  0x3a   :  { %v2081_v8 = vand.u32 127, %v198_v7  ;;  %1622 = vmatpush3.msra.mxu1 %v2094_v13  ;;  %v2134_v18 = vld [vmem:[%s2498_s3 + $0x50] sm:$0xff]  ;;  %v2143_v19 = vld [vmem:[%s2498_s3 + $0x48] sm:$0xff]  ;;  %v2152_v20 = vld [vmem:[%s2498_s3 + $0x40] sm:$0xff]  ;;  %s1951_s2 = smov 10   ;;  %vm506_vm13 = vcmask 80896  }
  0x3b   :  { %1623 = vmatprep.subr.mxu1 %v1946_v0  ;;  %v2161_v21 = vld [vmem:[%s2498_s3 + $0x38] sm:$0xff]  ;;  %v2170_v22 = vld [vmem:[%s2498_s3 + $0x30] sm:$0xff]  ;;  %v2179_v23 = vld [vmem:[%s2498_s3 + $0x28] sm:$0xff]  ;;  %vm508_vm14 = vcmask 113664   ;;  %vm1339_vm15 = vcmask 523264   ;;  %s1952_s25 = smov [#allocation10]  }
  0x3c   :  { %1624 = vmatpush3.msra.mxu1 %v2099_v14  ;;  %v2188_v24 = vld [vmem:[%s2498_s3 + $0x20] sm:$0xff]  ;;  %v2197_v25 = vld [vmem:[%s2498_s3 + $0x18] sm:$0xff]  ;;  %v202_v30 = vld [vmem:[%s2498_s3 + $0x10] sm:$0xff]  ;;  %s1422_s27 = sshll.u32 %s1952_s25, 4  ;;  %s1423_s27 = int_to_ptr.vmem [resolvable:$true] %s1422_s27 }
  0x3d   :  { %1625 = vmatprep.subr.mxu1 %v1946_v0  ;;  %v201_v31 = vld [vmem:[%s2498_s3 + $0x8] sm:$0xff]  ;;  %v200_v32 = vld [vmem:[%s2498_s3] sm:$0xff]  ;;  %s1949_s3 = smov 2   ;;  %s1910_s28 = scalar_lea.vmem %s1423_s27, 128 }
  0x3e   :  { %v112_v1 = vld [vmem:[%s2515_s30] sm:$0x3]  ;;  %1626 = vmatpush3.msra.mxu1 %v2107_v15  ;;  %p1911_p6 = scmp.ne.s32.totalorder %s1423_s27, %s1910_s28  ;;  %p1915_p7 = scmp.lt.s32.totalorder %s1423_s27, %s1423_s27 }
  0x3f   :  { %v2067_v2 = vld [vmem:[%s2516_s1] sm:$0xff]  ;;  %1617 = vmatpush3.msk.msra.mxu0 %vm124_vm1, %v112_v1  ;;  %1627 = vmatprep.subr.mxu1 %v1946_v0  ;;  %p1916_p8 = scmp.lt.s32.totalorder %s1910_s28, %s1910_s28 }
  0x40   :  { %1619 = vmatmul.mubr.msk.f32.vlgmr.msra.gmra.mxu0 %vm120_vm2, %v2067_v2  ;;  %1656 = vmatprep.subr.mxu0 %v1946_v0 }
  0x41   :  { %1688 = vmatprep.mubr.msk.f32.mxu0 %vm1947_vm0, %v1946_v0  ;;  %1657 = vmatpush3.msra.mxu0 %v2094_v13  ;;  %p1917_p9 = por %p1916_p8, %p1915_p7 }
  0x42   :  { %1658 = vmatprep.subr.mxu0 %v1946_v0  ;;  %1628 = vmatpush3.msra.mxu1 %v2116_v16 }
  0x43   :  { %1659 = vmatpush3.msra.mxu0 %v2099_v14  ;;  %1629 = vmatprep.subr.mxu1 %v1946_v0  ;;  %p1918_p10 = pnand %p1917_p9, %p1911_p6 }
  0x44   :  { %1660 = vmatprep.subr.mxu0 %v1946_v0  ;;  %1630 = vmatpush3.msra.mxu1 %v2125_v17 }
  0x45   :  { %1661 = vmatpush3.msra.mxu0 %v2107_v15  ;;  %1631 = vmatprep.subr.mxu1 %v1946_v0 }
  0x46   :  { %1662 = vmatprep.subr.mxu0 %v1946_v0  ;;  %1632 = vmatpush3.msra.mxu1 %v2134_v18 }
  0x47   :  { %1663 = vmatpush3.msra.mxu0 %v2116_v16  ;;  %1633 = vmatprep.subr.mxu1 %v1946_v0 }
  0x48   :  { %1664 = vmatprep.subr.mxu0 %v1946_v0  ;;  %1634 = vmatpush3.msra.mxu1 %v2143_v19 }
  0x49   :  { %1665 = vmatpush3.msra.mxu0 %v2125_v17  ;;  %1635 = vmatprep.subr.mxu1 %v1946_v0 }
  0x4a   :  { %1666 = vmatprep.subr.mxu0 %v1946_v0  ;;  %1636 = vmatpush3.msra.mxu1 %v2152_v20 }
  0x4b   :  { %1667 = vmatpush3.msra.mxu0 %v2134_v18  ;;  %1637 = vmatprep.subr.mxu1 %v1946_v0 }
  0x4c   :  { %1668 = vmatprep.subr.mxu0 %v1946_v0  ;;  %1638 = vmatpush3.msra.mxu1 %v2161_v21 }
  0x4d   :  { %1669 = vmatpush3.msra.mxu0 %v2143_v19  ;;  %1639 = vmatprep.subr.mxu1 %v1946_v0 }
  0x4e   :  { %1670 = vmatprep.subr.mxu0 %v1946_v0  ;;  %1640 = vmatpush3.msra.mxu1 %v2170_v22 }
  0x4f   :  { %1671 = vmatpush3.msra.mxu0 %v2152_v20  ;;  %1641 = vmatprep.subr.mxu1 %v1946_v0 }
  0x50   :  { %1672 = vmatprep.subr.mxu0 %v1946_v0  ;;  %1642 = vmatpush3.msra.mxu1 %v2179_v23 }
  0x51   :  { %1673 = vmatpush3.msra.mxu0 %v2161_v21  ;;  %1643 = vmatprep.subr.mxu1 %v1946_v0 }
  0x52   :  { %1674 = vmatprep.subr.mxu0 %v1946_v0  ;;  %1644 = vmatpush3.msra.mxu1 %v2188_v24 }
  0x53   :  { %1675 = vmatpush3.msra.mxu0 %v2170_v22  ;;  %1645 = vmatprep.subr.mxu1 %v1946_v0 }
  0x54   :  { %1676 = vmatprep.subr.mxu0 %v1946_v0  ;;  %1646 = vmatpush3.msra.mxu1 %v2197_v25 }
  0x55   :  { %1677 = vmatpush3.msra.mxu0 %v2179_v23  ;;  %1647 = vmatprep.subr.mxu1 %v1946_v0 }
  0x56   :  { %1678 = vmatprep.subr.mxu0 %v1946_v0  ;;  %1648 = vmatpush3.msra.mxu1 %v202_v30 }
  0x57   :  { %1679 = vmatpush3.msra.mxu0 %v2188_v24  ;;  %1649 = vmatprep.subr.mxu1 %v1946_v0 }
  0x58   :  { %1680 = vmatprep.subr.mxu0 %v1946_v0  ;;  %1650 = vmatpush3.msra.mxu1 %v201_v31 }
  0x59   :  { %1681 = vmatpush3.msra.mxu0 %v2197_v25  ;;  %1651 = vmatprep.subr.mxu1 %v1946_v0 }
  0x5a   :  { %1682 = vmatprep.subr.mxu0 %v1946_v0  ;;  %1652 = vmatpush3.msra.mxu1 %v200_v32 }
  0x5b   :  { %1683 = vmatpush3.msra.mxu0 %v202_v30  ;;  %1691 = vmatprep.subr.mxu1 %v1946_v0 }
  0x5c   :  { %1684 = vmatprep.subr.mxu0 %v1946_v0 }
  0x5d   :  { %1685 = vmatpush3.msra.mxu0 %v201_v31 }
  0x5e   :  { %1686 = vmatprep.subr.mxu0 %v1946_v0 }
  0x5f   :  { %1687 = vmatpush3.msra.mxu0 %v200_v32 }
  0x60   :  { %1726 = vmatprep.subr.mxu0 %v1946_v0 }
 0x100   :  { %v194_v4 = vpop.f32.mrf.mxu0 }
 0x101   :  { %v2077_v5 = vadd.f32 %v1435_v3, %v194_v4 }
 0x102   :  { %v1620_v6 = vpop.f32.mrf.mxu0 }
 0x103   :  { %216 = vmin.xlane.f32.xlu0 %v2077_v5 }
 0x18c   :  { %v217_v9 = vpop.xlane.xlu0 %216 }
 0x18d   :  { %vm218_vm3 = vcmp.le.f32.partialorder %v2077_v5, %v217_v9 }
 0x18e   :  { %v2085_v10 = vsel %vm218_vm3, %v2081_v8, 128 }
 0x18f   :  { %v221_v11 = vshra.s32 %v2085_v10, 16  ;;  %v220_v26 = vand.u32 65535, %v2085_v10 }
 0x191   :  { %v2088_v12 = vcvt.s32.f32 %v221_v11  ;;  %v222_v28 = vcvt.s32.f32 %v220_v26  ;;  %v526_v11 = vld [vmem:[#allocation2 + $0x78] sm:$0xff] }
 0x192   :  { %v636_v26 = vld [vmem:[%s2500_s5 + $0xf8] sm:$0xff] }
 0x193   :  { %224 = vmin.xlane.f32.xlu0 %v2088_v12 }
 0x21c   :  { %v225_v27 = vpop.xlane.xlu0 %224 }
 0x21d   :  { %vm226_vm4 = vcmp.eq.f32.partialorder %v2088_v12, %v225_v27  ;;  %v231_v33 = vcvt.f32.s32 %v225_v27  ;;  %v525_v12 = vld [vmem:[#allocation2 + $0x70] sm:$0xff] }
 0x21e   :  { %v227_v29 = vsel %vm226_vm4, %v222_v28, inf  ;;  %v635_v27 = vld [vmem:[%s2500_s5 + $0xf0] sm:$0xff]  ;;  %v634_v28 = vld [vmem:[%s2500_s5 + $0xe8] sm:$0xff] }
 0x21f   :  { %228 = vmin.xlane.f32.xlu1 %v227_v29  ;;  %v232_v35 = vshll.u32 %v231_v33, 16  ;;  %v633_v29 = vld [vmem:[%s2500_s5 + $0xe0] sm:$0xff] }
 0x220   :  { %v629_v33 = vld [vmem:[%s2500_s5 + $0xc0] sm:$0xff] }
 0x2a8   :  { %v229_v34 = vpop.xlane.xlu1 %228 }
 0x2a9   :  { %v230_v36 = vcvt.f32.s32 %v229_v34  ;;  %v628_v34 = vld [vmem:[%s2500_s5 + $0xb8] sm:$0xff] }
 0x2ab   :  { %v233_v37 = vadd.s32 %v232_v35, %v230_v36  ;;  %v627_v35 = vld [vmem:[%s2500_s5 + $0xb0] sm:$0xff]  ;;  %v626_v36 = vld [vmem:[%s2500_s5 + $0xa8] sm:$0xff] }
 0x2ad   :  { %vm234_vm5 = vcmp.eq.s32.totalorder %v2081_v8, %v233_v37  ;;  %v625_v37 = vld [vmem:[%s2500_s5 + $0xa0] sm:$0xff] }
 0x2ae   :  { %1654 = vmatmul.mubr.msk.f32.vlgmr.msra.gmra.mxu1 %vm234_vm5, %v1948_v38  ;;  %v307_v39 = vsel %vm234_vm5, 1e+30, %v2077_v5 }
 0x2af   :  { %308 = vmin.xlane.f32.xlu1 %v307_v39  ;;  %1692 = vmatpush3.msra.mxu1 %v2094_v13  ;;  %v524_v13 = vld [vmem:[#allocation2 + $0x68] sm:$0xff] }
 0x2b0   :  { %1693 = vmatprep.subr.mxu1 %v1946_v0  ;;  %1723 = vmatprep.mubr.msk.f32.mxu1 %vm1947_vm0, %v1946_v0 }
 0x2b1   :  { %1694 = vmatpush3.msra.mxu1 %v2099_v14  ;;  %v523_v14 = vld [vmem:[#allocation2 + $0x60] sm:$0xff] }
 0x2b2   :  { %1695 = vmatprep.subr.mxu1 %v1946_v0 }
 0x2b3   :  { %1696 = vmatpush3.msra.mxu1 %v2107_v15  ;;  %v522_v15 = vld [vmem:[#allocation2 + $0x58] sm:$0xff] }
 0x2b4   :  { %1697 = vmatprep.subr.mxu1 %v1946_v0 }
 0x2b5   :  { %1698 = vmatpush3.msra.mxu1 %v2116_v16  ;;  %v520_v16 = vld [vmem:[#allocation2 + $0x48] sm:$0xff] }
 0x2b6   :  { %1699 = vmatprep.subr.mxu1 %v1946_v0 }
 0x2b7   :  { %1700 = vmatpush3.msra.mxu1 %v2125_v17  ;;  %v519_v17 = vld [vmem:[#allocation2 + $0x40] sm:$0xff] }
 0x2b8   :  { %1701 = vmatprep.subr.mxu1 %v1946_v0 }
 0x2b9   :  { %1702 = vmatpush3.msra.mxu1 %v2134_v18  ;;  %v518_v18 = vld [vmem:[#allocation2 + $0x38] sm:$0xff] }
 0x2ba   :  { %1703 = vmatprep.subr.mxu1 %v1946_v0 }
 0x2bb   :  { %1704 = vmatpush3.msra.mxu1 %v2143_v19  ;;  %v517_v19 = vld [vmem:[#allocation2 + $0x30] sm:$0xff] }
 0x2bc   :  { %1705 = vmatprep.subr.mxu1 %v1946_v0 }
 0x2bd   :  { %1706 = vmatpush3.msra.mxu1 %v2152_v20  ;;  %v516_v20 = vld [vmem:[#allocation2 + $0x28] sm:$0xff] }
 0x2be   :  { %1707 = vmatprep.subr.mxu1 %v1946_v0 }
 0x2bf   :  { %1708 = vmatpush3.msra.mxu1 %v2161_v21  ;;  %v515_v21 = vld [vmem:[#allocation2 + $0x20] sm:$0xff] }
 0x2c0   :  { %1709 = vmatprep.subr.mxu1 %v1946_v0 }
 0x2c1   :  { %1710 = vmatpush3.msra.mxu1 %v2170_v22  ;;  %v514_v22 = vld [vmem:[#allocation2 + $0x18] sm:$0xff] }
 0x2c2   :  { %1711 = vmatprep.subr.mxu1 %v1946_v0 }
 0x2c3   :  { %1712 = vmatpush3.msra.mxu1 %v2179_v23  ;;  %v513_v23 = vld [vmem:[#allocation2 + $0x10] sm:$0xff] }
 0x2c4   :  { %1713 = vmatprep.subr.mxu1 %v1946_v0 }
 0x2c5   :  { %1714 = vmatpush3.msra.mxu1 %v2188_v24  ;;  %v512_v24 = vld [vmem:[#allocation2 + $0x8] sm:$0xff] }
 0x2c6   :  { %1715 = vmatprep.subr.mxu1 %v1946_v0 }
 0x2c7   :  { %1716 = vmatpush3.msra.mxu1 %v2197_v25  ;;  %v511_v25 = vld [vmem:[#allocation2] sm:$0xff] }
 0x2c8   :  { %1717 = vmatprep.subr.mxu1 %v1946_v0 }
 0x2c9   :  { %1718 = vmatpush3.msra.mxu1 %v202_v30  ;;  %v632_v30 = vld [vmem:[%s2500_s5 + $0xd8] sm:$0xff] }
 0x2ca   :  { %1719 = vmatprep.subr.mxu1 %v1946_v0 }
 0x2cb   :  { %1720 = vmatpush3.msra.mxu1 %v201_v31  ;;  %v631_v31 = vld [vmem:[%s2500_s5 + $0xd0] sm:$0xff] }
 0x2cc   :  { %1721 = vmatprep.subr.mxu1 %v1946_v0 }
 0x2cd   :  { %1722 = vmatpush3.msra.mxu1 %v200_v32  ;;  %v630_v32 = vld [vmem:[%s2500_s5 + $0xc8] sm:$0xff] }
 0x2ce   :  { %649 = vmatprep.subr.mxu1 %v636_v26  ;;  %v743_v26 = vld [vmem:[#allocation5 + $0xa8] sm:$0xff] }
 0x338   :  { %v309_v40 = vpop.xlane.xlu1 %308 }
 0x339   :  { %vm310_vm6 = vcmp.le.f32.partialorder %v307_v39, %v309_v40  ;;  %v623_v40 = vld [vmem:[%s2500_s5 + $0x90] sm:$0xff] }
 0x33a   :  { %v311_v41 = vsel %vm310_vm6, %v2081_v8, 128 }
 0x33b   :  { %v313_v42 = vshra.s32 %v311_v41, 16  ;;  %v312_v46 = vand.u32 65535, %v311_v41  ;;  %v622_v41 = vld [vmem:[%s2500_s5 + $0x88] sm:$0xff] }
 0x33d   :  { %v315_v43 = vcvt.s32.f32 %v313_v42  ;;  %v314_v48 = vcvt.s32.f32 %v312_v46  ;;  %v618_v46 = vld [vmem:[%s2500_s5 + $0x68] sm:$0xff] }
 0x33f   :  { %316 = vmin.xlane.f32.xlu0 %v315_v43 }
 0x36e   :  { %v303_v44 = vpop.f32.mrf.mxu1 }
 0x370   :  { %v1655_v45 = vpop.f32.mrf.mxu1 }
 0x371   :  { %v619_v45 = vld [vmem:[%s2500_s5 + $0x70] sm:$0xff] }
 0x3c8   :  { %v317_v47 = vpop.xlane.xlu0 %316 }
 0x3c9   :  { %vm318_vm7 = vcmp.eq.f32.partialorder %v315_v43, %v317_v47  ;;  %v323_v50 = vcvt.f32.s32 %v317_v47  ;;  %v621_v43 = vld [vmem:[%s2500_s5 + $0x80] sm:$0xff] }
 0x3ca   :  { %v319_v49 = vsel %vm318_vm7, %v314_v48, inf  ;;  %v617_v47 = vld [vmem:[%s2500_s5 + $0x60] sm:$0xff]  ;;  %v616_v48 = vld [vmem:[%s2500_s5 + $0x58] sm:$0xff] }
 0x3cb   :  { %320 = vmin.xlane.f32.xlu1 %v319_v49  ;;  %v324_v52 = vshll.u32 %v323_v50, 16  ;;  %v615_v49 = vld [vmem:[%s2500_s5 + $0x50] sm:$0xff]  ;;  %v614_v50 = vld [vmem:[%s2500_s5 + $0x48] sm:$0xff] }
 0x454   :  { %v321_v51 = vpop.xlane.xlu1 %320 }
 0x455   :  { %v322_v53 = vcvt.f32.s32 %v321_v51  ;;  %v613_v51 = vld [vmem:[%s2500_s5 + $0x40] sm:$0xff] }
 0x457   :  { %v325_v54 = vadd.s32 %v324_v52, %v322_v53  ;;  %v612_v52 = vld [vmem:[%s2500_s5 + $0x38] sm:$0xff]  ;;  %v611_v53 = vld [vmem:[%s2500_s5 + $0x30] sm:$0xff] }
 0x459   :  { %vm326_vm8 = vcmp.eq.s32.totalorder %v2081_v8, %v325_v54  ;;  %v610_v54 = vld [vmem:[%s2500_s5 + $0x28] sm:$0xff] }
 0x45a   :  { %1689 = vmatmul.mubr.msk.f32.vlgmr.msra.gmra.mxu0 %vm326_vm8, %v1948_v38  ;;  %v399_v55 = vsel %vm326_vm8, 1e+30, %v307_v39 }
 0x45b   :  { %400 = vmin.xlane.f32.xlu0 %v399_v55  ;;  %1758 = vmatprep.mubr.msk.f32.mxu0 %vm1947_vm0, %v1946_v0 }
 0x45c   :  { %1727 = vmatpush3.msra.mxu0 %v526_v11  ;;  %v775_v11 = vld [vmem:[#allocation5 + $0x1a8] sm:$0xff] }
 0x45d   :  { %1728 = vmatprep.subr.mxu0 %v1946_v0 }
 0x45e   :  { %1729 = vmatpush3.msra.mxu0 %v525_v12  ;;  %v774_v12 = vld [vmem:[#allocation5 + $0x1a0] sm:$0xff] }
 0x45f   :  { %1730 = vmatprep.subr.mxu0 %v1946_v0 }
 0x460   :  { %1731 = vmatpush3.msra.mxu0 %v524_v13  ;;  %v771_v13 = vld [vmem:[#allocation5 + $0x188] sm:$0xff] }
 0x461   :  { %1732 = vmatprep.subr.mxu0 %v1946_v0 }
 0x462   :  { %1733 = vmatpush3.msra.mxu0 %v523_v14  ;;  %v770_v14 = vld [vmem:[#allocation5 + $0x180] sm:$0xff] }
 0x463   :  { %1734 = vmatprep.subr.mxu0 %v1946_v0 }
 0x464   :  { %1735 = vmatpush3.msra.mxu0 %v522_v15  ;;  %v767_v15 = vld [vmem:[#allocation5 + $0x168] sm:$0xff] }
 0x465   :  { %1736 = vmatprep.subr.mxu0 %v1946_v0 }
 0x4e4   :  { %v401_v56 = vpop.xlane.xlu0 %400 }
 0x4e5   :  { %vm402_vm9 = vcmp.le.f32.partialorder %v399_v55, %v401_v56 }
 0x4e6   :  { %v403_v57 = vsel %vm402_vm9, %v2081_v8, 128 }
 0x4e7   :  { %v405_v58 = vshra.s32 %v403_v57, 16  ;;  %v404_v62 = vand.u32 65535, %v403_v57 }
 0x4e9   :  { %v407_v59 = vcvt.s32.f32 %v405_v58  ;;  %v406_v1 = vcvt.s32.f32 %v404_v62  ;;  %v609_v62 = vld [vmem:[%s2500_s5 + $0x20] sm:$0xff] }
 0x4eb   :  { %408 = vmin.xlane.f32.xlu1 %v407_v59 }
 0x4fc   :  { %492 = vrot.lane.b32.xlu1 %v303_v44, %s1949_s3  ;;  %v620_v44 = vld [vmem:[%s2500_s5 + $0x78] sm:$0xff] }
 0x51a   :  { %v395_v60 = vpop.f32.mrf.mxu0 }
 0x51c   :  { %v1690_v61 = vpop.f32.mrf.mxu0 }
 0x574   :  { %v409_v63 = vpop.xlane.xlu1 %408 }
 0x575   :  { %vm410_vm10 = vcmp.eq.f32.partialorder %v407_v59, %v409_v63  ;;  %v415_v4 = vcvt.f32.s32 %v409_v63  ;;  %v608_v63 = vld [vmem:[%s2500_s5 + $0x18] sm:$0xff] }
 0x576   :  { %v411_v3 = vsel %vm410_vm10, %v406_v1, inf  ;;  %v606_v1 = vld [vmem:[%s2500_s5 + $0x8] sm:$0xff] }
 0x577   :  { %412 = vmin.xlane.f32.xlu0 %v411_v3  ;;  %v416_v6 = vshll.u32 %v415_v4, 16  ;;  %v605_v3 = vld [vmem:[%s2500_s5] sm:$0xff]  ;;  %v783_v4 = vld [vmem:[#allocation5 + $0x1e8] sm:$0xff] }
 0x578   :  { %v493_v55 = vpop.permute.xlu1 %492 }
 0x579   :  { %v503_v57 = vsel %vm120_vm2, %v2067_v2, %v493_v55  ;;  %v607_v2 = vld [vmem:[%s2500_s5 + $0x10] sm:$0xff]  ;;  %v814_v55 = vld [vmem:[#allocation5 + $0x2e0] sm:$0xff] }
 0x58d   :  { %496 = vrot.lane.b32.xlu0 %v395_v60, %s1950_s7 }
 0x600   :  { %v413_v5 = vpop.xlane.xlu0 %412 }
 0x601   :  { %v414_v9 = vcvt.f32.s32 %v413_v5  ;;  %v785_v5 = vld [vmem:[#allocation5 + $0x1f8] sm:$0xff] }
 0x603   :  { %v417_v10 = vadd.s32 %v416_v6, %v414_v9  ;;  %v782_v6 = vld [vmem:[#allocation5 + $0x1e0] sm:$0xff]  ;;  %v779_v9 = vld [vmem:[#allocation5 + $0x1c8] sm:$0xff] }
 0x604   :  { %v497_v56 = vpop.permute.xlu0 %496 }
 0x605   :  { %vm418_vm11 = vcmp.eq.s32.totalorder %v2081_v8, %v417_v10  ;;  %v521_v8 = vld [vmem:[#allocation2 + $0x50] sm:$0xff]  ;;  %v505_v58 = vsel %vm504_vm12, %v503_v57, %v497_v56  ;;  %v778_v10 = vld [vmem:[#allocation5 + $0x1c0] sm:$0xff]  ;;  %v811_v56 = vld [vmem:[#allocation5 + $0x2c8] sm:$0xff] }
 0x606   :  { %1724 = vmatmul.mubr.msk.f32.vlgmr.msra.gmra.mxu1 %vm418_vm11, %v1948_v38  ;;  %1737 = vmatpush3.msra.mxu0 %v521_v8  ;;  %v624_v38 = vld [vmem:[%s2500_s5 + $0x98] sm:$0xff]  ;;  %v766_v8 = vld [vmem:[#allocation5 + $0x160] sm:$0xff] }
 0x607   :  { %713 = vmatprep.mubr.f32.mxu1 %v1946_v0  ;;  %1738 = vmatprep.subr.mxu0 %v1946_v0  ;;  %v810_v57 = vld [vmem:[#allocation5 + $0x2c0] sm:$0xff] }
 0x608   :  { %1739 = vmatpush3.msra.mxu0 %v520_v16  ;;  %650 = vmatpush1.msra.mxu1 %v635_v27  ;;  %v763_v16 = vld [vmem:[#allocation5 + $0x148] sm:$0xff]  ;;  %v742_v27 = vld [vmem:[#allocation5 + $0xa0] sm:$0xff] }
 0x609   :  { %1740 = vmatprep.subr.mxu0 %v1946_v0  ;;  %651 = vmatprep.subr.mxu1 %v634_v28  ;;  %v739_v28 = vld [vmem:[#allocation5 + $0x88] sm:$0xff] }
 0x60a   :  { %1741 = vmatpush3.msra.mxu0 %v519_v17  ;;  %652 = vmatpush1.msra.mxu1 %v633_v29  ;;  %v762_v17 = vld [vmem:[#allocation5 + $0x140] sm:$0xff] }
 0x60b   :  { %1742 = vmatprep.subr.mxu0 %v1946_v0  ;;  %653 = vmatprep.subr.mxu1 %v632_v30  ;;  %v738_v29 = vld [vmem:[#allocation5 + $0x80] sm:$0xff]  ;;  %v735_v30 = vld [vmem:[#allocation5 + $0x68] sm:$0xff] }
 0x60c   :  { %1743 = vmatpush3.msra.mxu0 %v518_v18  ;;  %654 = vmatpush1.msra.mxu1 %v631_v31  ;;  %v759_v18 = vld [vmem:[#allocation5 + $0x128] sm:$0xff]  ;;  %v734_v31 = vld [vmem:[#allocation5 + $0x60] sm:$0xff] }
 0x60d   :  { %1744 = vmatprep.subr.mxu0 %v1946_v0  ;;  %655 = vmatprep.subr.mxu1 %v630_v32  ;;  %v731_v32 = vld [vmem:[#allocation5 + $0x48] sm:$0xff] }
 0x60e   :  { %1745 = vmatpush3.msra.mxu0 %v517_v19  ;;  %656 = vmatpush1.msra.mxu1 %v629_v33  ;;  %v758_v19 = vld [vmem:[#allocation5 + $0x120] sm:$0xff] }
 0x60f   :  { %1746 = vmatprep.subr.mxu0 %v1946_v0  ;;  %657 = vmatprep.subr.mxu1 %v628_v34  ;;  %v730_v33 = vld [vmem:[#allocation5 + $0x40] sm:$0xff]  ;;  %v727_v34 = vld [vmem:[#allocation5 + $0x28] sm:$0xff] }
 0x610   :  { %1747 = vmatpush3.msra.mxu0 %v516_v20  ;;  %658 = vmatpush1.msra.mxu1 %v627_v35  ;;  %v755_v20 = vld [vmem:[#allocation5 + $0x108] sm:$0xff]  ;;  %v726_v35 = vld [vmem:[#allocation5 + $0x20] sm:$0xff] }
 0x611   :  { %1748 = vmatprep.subr.mxu0 %v1946_v0  ;;  %659 = vmatprep.subr.mxu1 %v626_v36  ;;  %v723_v36 = vld [vmem:[#allocation5 + $0x8] sm:$0xff] }
 0x612   :  { %1749 = vmatpush3.msra.mxu0 %v515_v21  ;;  %660 = vmatpush1.msra.mxu1 %v625_v37  ;;  %v754_v21 = vld [vmem:[#allocation5 + $0x100] sm:$0xff] }
 0x613   :  { %1750 = vmatprep.subr.mxu0 %v1946_v0  ;;  %661 = vmatprep.subr.mxu1 %v624_v38  ;;  %v722_v37 = vld [vmem:[#allocation5] sm:$0xff]  ;;  %v847_v38 = vld [vmem:[#allocation5 + $0x3e8] sm:$0xff] }
 0x614   :  { %1751 = vmatpush3.msra.mxu0 %v514_v22  ;;  %662 = vmatpush1.msra.mxu1 %v623_v40  ;;  %v751_v22 = vld [vmem:[#allocation5 + $0xe8] sm:$0xff] }
 0x615   :  { %1752 = vmatprep.subr.mxu0 %v1946_v0  ;;  %663 = vmatprep.subr.mxu1 %v622_v41  ;;  %v843_v40 = vld [vmem:[#allocation5 + $0x3c8] sm:$0xff]  ;;  %v842_v41 = vld [vmem:[#allocation5 + $0x3c0] sm:$0xff] }
 0x616   :  { %1753 = vmatpush3.msra.mxu0 %v513_v23  ;;  %664 = vmatpush1.msra.mxu1 %v621_v43  ;;  %v750_v23 = vld [vmem:[#allocation5 + $0xe0] sm:$0xff] }
 0x617   :  { %1754 = vmatprep.subr.mxu0 %v1946_v0  ;;  %665 = vmatprep.subr.mxu1 %v620_v44  ;;  %v838_v43 = vld [vmem:[#allocation5 + $0x3a0] sm:$0xff]  ;;  %v835_v44 = vld [vmem:[#allocation5 + $0x388] sm:$0xff] }
 0x618   :  { %1755 = vmatpush3.msra.mxu0 %v512_v24  ;;  %666 = vmatpush1.msra.mxu1 %v619_v45  ;;  %v747_v24 = vld [vmem:[#allocation5 + $0xc8] sm:$0xff]  ;;  %v834_v45 = vld [vmem:[#allocation5 + $0x380] sm:$0xff] }
 0x619   :  { %1756 = vmatprep.subr.mxu0 %v1946_v0  ;;  %667 = vmatprep.subr.mxu1 %v618_v46  ;;  %v831_v46 = vld [vmem:[#allocation5 + $0x368] sm:$0xff] }
 0x61a   :  { %1757 = vmatpush3.msra.mxu0 %v511_v25  ;;  %668 = vmatpush1.msra.mxu1 %v617_v47  ;;  %v746_v25 = vld [vmem:[#allocation5 + $0xc0] sm:$0xff] }
 0x61b   :  { %669 = vmatprep.subr.mxu1 %v616_v48  ;;  %872 = vmatprep.subr.mxu0 %v783_v4  ;;  %v830_v47 = vld [vmem:[#allocation5 + $0x360] sm:$0xff]  ;;  %v827_v48 = vld [vmem:[#allocation5 + $0x348] sm:$0xff]  ;;  %v784_v4 = vld [vmem:[#allocation5 + $0x1f0] sm:$0xff] }
 0x61c   :  { %670 = vmatpush1.msra.mxu1 %v615_v49  ;;  %v826_v49 = vld [vmem:[#allocation5 + $0x340] sm:$0xff] }
 0x61d   :  { %671 = vmatprep.subr.mxu1 %v614_v50  ;;  %v823_v50 = vld [vmem:[#allocation5 + $0x328] sm:$0xff] }
 0x61e   :  { %672 = vmatpush1.msra.mxu1 %v613_v51  ;;  %v822_v51 = vld [vmem:[#allocation5 + $0x320] sm:$0xff] }
 0x61f   :  { %673 = vmatprep.subr.mxu1 %v612_v52  ;;  %v819_v52 = vld [vmem:[#allocation5 + $0x308] sm:$0xff] }
 0x620   :  { %674 = vmatpush1.msra.mxu1 %v611_v53  ;;  %v818_v53 = vld [vmem:[#allocation5 + $0x300] sm:$0xff] }
 0x621   :  { %675 = vmatprep.subr.mxu1 %v610_v54  ;;  %v815_v54 = vld [vmem:[#allocation5 + $0x2e8] sm:$0xff] }
 0x622   :  { %676 = vmatpush1.msra.mxu1 %v609_v62  ;;  %v1444_v62 = vld [vmem:[%s2505_s10] ss:$0 sm:$0xff] }
 0x623   :  { %677 = vmatprep.subr.mxu1 %v608_v63 }
 0x624   :  { %678 = vmatpush1.msra.mxu1 %v607_v2 }
 0x625   :  { %679 = vmatprep.subr.mxu1 %v606_v1 }
 0x626   :  { %680 = vmatpush1.msra.mxu1 %v605_v3 }
 0x627   :  { %943 = vmatprep.subr.mxu1 %v785_v5  ;;  %v781_v5 = vld [vmem:[#allocation5 + $0x1d8] sm:$0xff] }
 0x6c6   :  { %v487_v39 = vpop.f32.mrf.mxu1 }
 0x6c7   :  { %500 = vrot.lane.b32.xlu1 %v487_v39, %s1951_s2  ;;  %v846_v39 = vld [vmem:[#allocation5 + $0x3e0] sm:$0xff] }
 0x6c8   :  { %v1725_v42 = vpop.f32.mrf.mxu1 }
 0x6c9   :  { %v839_v42 = vld [vmem:[#allocation5 + $0x3a8] sm:$0xff] }
 0x739   :  { %v501_v59 = vpop.permute.xlu1 %500 }
 0x73a   :  { %v507_v60 = vsel %vm506_vm13, %v505_v58, %v501_v59  ;;  %v807_v58 = vld [vmem:[#allocation5 + $0x2a8] sm:$0xff]  ;;  %v806_v59 = vld [vmem:[#allocation5 + $0x2a0] sm:$0xff] }
 0x73b   :  { %1759 = vmatmul.mubr.msk.f32.vlgmr.msra.gmra.mxu0 %vm508_vm14, %v507_v60  ;;  %v509_v61 = vsel %vm508_vm14, %v507_v60, 0.0  ;;  %v803_v60 = vld [vmem:[#allocation5 + $0x288] sm:$0xff] }
 0x73c   :  { %510 = vst [vmem:[#allocation10] sm:$0xff] %v509_v61  ;;  %873 = vmatpush1.msra.mxu0 %v782_v6  ;;  %v802_v61 = vld [vmem:[#allocation5 + $0x280] sm:$0xff]  ;;  %v780_v6 = vld [vmem:[#allocation5 + $0x1d0] sm:$0xff] }
 0x73d   :  { %874 = vmatprep.subr.mxu0 %v779_v9  ;;  %v777_v9 = vld [vmem:[#allocation5 + $0x1b8] sm:$0xff] }
 0x73e   :  { %875 = vmatpush1.msra.mxu0 %v778_v10  ;;  %v776_v10 = vld [vmem:[#allocation5 + $0x1b0] sm:$0xff] }
 0x73f   :  { %876 = vmatprep.subr.mxu0 %v775_v11  ;;  %v773_v11 = vld [vmem:[#allocation5 + $0x198] sm:$0xff] }
 0x740   :  { %877 = vmatpush1.msra.mxu0 %v774_v12  ;;  %v772_v12 = vld [vmem:[#allocation5 + $0x190] sm:$0xff] }
 0x741   :  { %878 = vmatprep.subr.mxu0 %v771_v13  ;;  %v769_v13 = vld [vmem:[#allocation5 + $0x178] sm:$0xff] }
 0x742   :  { %879 = vmatpush1.msra.mxu0 %v770_v14  ;;  %v768_v14 = vld [vmem:[#allocation5 + $0x170] sm:$0xff] }
 0x743   :  { %880 = vmatprep.subr.mxu0 %v767_v15  ;;  %v765_v15 = vld [vmem:[#allocation5 + $0x158] sm:$0xff] }
 0x744   :  { %881 = vmatpush1.msra.mxu0 %v766_v8  ;;  %v764_v8 = vld [vmem:[#allocation5 + $0x150] sm:$0xff] }
 0x745   :  { %882 = vmatprep.subr.mxu0 %v763_v16  ;;  %v761_v16 = vld [vmem:[#allocation5 + $0x138] sm:$0xff] }
 0x746   :  { %883 = vmatpush1.msra.mxu0 %v762_v17  ;;  %v760_v17 = vld [vmem:[#allocation5 + $0x130] sm:$0xff] }
 0x747   :  { %884 = vmatprep.subr.mxu0 %v759_v18  ;;  %v757_v18 = vld [vmem:[#allocation5 + $0x118] sm:$0xff] }
 0x748   :  { %885 = vmatpush1.msra.mxu0 %v758_v19  ;;  %v756_v19 = vld [vmem:[#allocation5 + $0x110] sm:$0xff] }
 0x749   :  { %886 = vmatprep.subr.mxu0 %v755_v20  ;;  %v753_v20 = vld [vmem:[#allocation5 + $0xf8] sm:$0xff] }
 0x74a   :  { %887 = vmatpush1.msra.mxu0 %v754_v21  ;;  %v752_v21 = vld [vmem:[#allocation5 + $0xf0] sm:$0xff] }
 0x74b   :  { %888 = vmatprep.subr.mxu0 %v751_v22  ;;  %v749_v22 = vld [vmem:[#allocation5 + $0xd8] sm:$0xff] }
 0x74c   :  { %889 = vmatpush1.msra.mxu0 %v750_v23  ;;  %v748_v23 = vld [vmem:[#allocation5 + $0xd0] sm:$0xff] }
 0x74d   :  { %890 = vmatprep.subr.mxu0 %v747_v24  ;;  %v745_v24 = vld [vmem:[#allocation5 + $0xb8] sm:$0xff] }
 0x74e   :  { %891 = vmatpush1.msra.mxu0 %v746_v25  ;;  %v744_v25 = vld [vmem:[#allocation5 + $0xb0] sm:$0xff] }
 0x74f   :  { %892 = vmatprep.subr.mxu0 %v743_v26  ;;  %v741_v26 = vld [vmem:[#allocation5 + $0x98] sm:$0xff] }
 0x750   :  { %893 = vmatpush1.msra.mxu0 %v742_v27  ;;  %v740_v27 = vld [vmem:[#allocation5 + $0x90] sm:$0xff] }
 0x751   :  { %894 = vmatprep.subr.mxu0 %v739_v28  ;;  %v737_v28 = vld [vmem:[#allocation5 + $0x78] sm:$0xff] }
 0x752   :  { %895 = vmatpush1.msra.mxu0 %v738_v29  ;;  %v736_v29 = vld [vmem:[#allocation5 + $0x70] sm:$0xff] }
 0x753   :  { %896 = vmatprep.subr.mxu0 %v735_v30  ;;  %v733_v30 = vld [vmem:[#allocation5 + $0x58] sm:$0xff] }
 0x754   :  { %897 = vmatpush1.msra.mxu0 %v734_v31  ;;  %v732_v31 = vld [vmem:[#allocation5 + $0x50] sm:$0xff] }
 0x755   :  { %898 = vmatprep.subr.mxu0 %v731_v32  ;;  %v729_v32 = vld [vmem:[#allocation5 + $0x38] sm:$0xff] }
 0x756   :  { %899 = vmatpush1.msra.mxu0 %v730_v33  ;;  %v728_v33 = vld [vmem:[#allocation5 + $0x30] sm:$0xff] }
 0x757   :  { %900 = vmatprep.subr.mxu0 %v727_v34  ;;  %v725_v34 = vld [vmem:[#allocation5 + $0x18] sm:$0xff] }
 0x758   :  { %901 = vmatpush1.msra.mxu0 %v726_v35  ;;  %v724_v35 = vld [vmem:[#allocation5 + $0x10] sm:$0xff] }
 0x759   :  { %902 = vmatprep.subr.mxu0 %v723_v36  ;;  %v849_v36 = vld [vmem:[#allocation5 + $0x3f8] sm:$0xff] }
 0x75a   :  { %903 = vmatpush1.msra.mxu0 %v722_v37  ;;  %v848_v37 = vld [vmem:[#allocation5 + $0x3f0] sm:$0xff] }
 0x75b   :  { %904 = vmatprep.subr.mxu0 %v847_v38  ;;  %v845_v38 = vld [vmem:[#allocation5 + $0x3d8] sm:$0xff] }
 0x75c   :  { %905 = vmatpush2.msra.mxu0 %v846_v39  ;;  %v844_v39 = vld [vmem:[#allocation5 + $0x3d0] sm:$0xff] }
 0x75d   :  { %906 = vmatprep.subr.mxu0 %v843_v40  ;;  %v841_v40 = vld [vmem:[#allocation5 + $0x3b8] sm:$0xff] }
 0x75e   :  { %907 = vmatpush2.msra.mxu0 %v842_v41  ;;  %v840_v41 = vld [vmem:[#allocation5 + $0x3b0] sm:$0xff] }
 0x75f   :  { %908 = vmatprep.subr.mxu0 %v839_v42  ;;  %v837_v42 = vld [vmem:[#allocation5 + $0x398] sm:$0xff] }
 0x760   :  { %909 = vmatpush2.msra.mxu0 %v838_v43  ;;  %v836_v43 = vld [vmem:[#allocation5 + $0x390] sm:$0xff] }
 0x761   :  { %910 = vmatprep.subr.mxu0 %v835_v44  ;;  %v833_v44 = vld [vmem:[#allocation5 + $0x378] sm:$0xff] }
 0x762   :  { %911 = vmatpush2.msra.mxu0 %v834_v45  ;;  %v832_v45 = vld [vmem:[#allocation5 + $0x370] sm:$0xff] }
 0x763   :  { %912 = vmatprep.subr.mxu0 %v831_v46  ;;  %v829_v46 = vld [vmem:[#allocation5 + $0x358] sm:$0xff] }
 0x764   :  { %913 = vmatpush2.msra.mxu0 %v830_v47  ;;  %v828_v47 = vld [vmem:[#allocation5 + $0x350] sm:$0xff] }
 0x765   :  { %914 = vmatprep.subr.mxu0 %v827_v48  ;;  %v825_v48 = vld [vmem:[#allocation5 + $0x338] sm:$0xff] }
 0x766   :  { %915 = vmatpush2.msra.mxu0 %v826_v49  ;;  %v824_v49 = vld [vmem:[#allocation5 + $0x330] sm:$0xff] }
 0x767   :  { %916 = vmatprep.subr.mxu0 %v823_v50  ;;  %v821_v50 = vld [vmem:[#allocation5 + $0x318] sm:$0xff] }
 0x768   :  { %917 = vmatpush2.msra.mxu0 %v822_v51  ;;  %v820_v51 = vld [vmem:[#allocation5 + $0x310] sm:$0xff] }
 0x769   :  { %918 = vmatprep.subr.mxu0 %v819_v52  ;;  %v817_v52 = vld [vmem:[#allocation5 + $0x2f8] sm:$0xff] }
 0x76a   :  { %919 = vmatpush2.msra.mxu0 %v818_v53  ;;  %v816_v53 = vld [vmem:[#allocation5 + $0x2f0] sm:$0xff] }
 0x76b   :  { %920 = vmatprep.subr.mxu0 %v815_v54  ;;  %v813_v54 = vld [vmem:[#allocation5 + $0x2d8] sm:$0xff] }
 0x76c   :  { %921 = vmatpush2.msra.mxu0 %v814_v55  ;;  %v812_v55 = vld [vmem:[#allocation5 + $0x2d0] sm:$0xff] }
 0x76d   :  { %922 = vmatprep.subr.mxu0 %v811_v56  ;;  %v809_v56 = vld [vmem:[#allocation5 + $0x2b8] sm:$0xff] }
 0x76e   :  { %923 = vmatpush2.msra.mxu0 %v810_v57  ;;  %v808_v57 = vld [vmem:[#allocation5 + $0x2b0] sm:$0xff] }
 0x76f   :  { %924 = vmatprep.subr.mxu0 %v807_v58  ;;  %v805_v58 = vld [vmem:[#allocation5 + $0x298] sm:$0xff] }
 0x770   :  { %925 = vmatpush2.msra.mxu0 %v806_v59  ;;  %v804_v59 = vld [vmem:[#allocation5 + $0x290] sm:$0xff] }
 0x771   :  { %926 = vmatprep.subr.mxu0 %v803_v60  ;;  %v799_v60 = vld [vmem:[#allocation5 + $0x268] sm:$0xff] }
 0x772   :  { %927 = vmatpush2.msra.mxu0 %v802_v61  ;;  %v801_v61 = vld [vmem:[#allocation5 + $0x278] sm:$0xff] }
 0x773   :  { %928 = vmatprep.subr.mxu0 %v799_v60  ;;  %v1057_v60 = vld [vmem:[#allocation7 + $0x138] sm:$0xff] }
 0x7fb   :  { %v600_v63 = vpop.f32.mrf.mxu0 }
 0x7fc   :  { %v601_v2 = vadd.f32 %v1444_v62, %v600_v63  ;;  %v798_v62 = vld [vmem:[#allocation5 + $0x260] sm:$0xff]  ;;  %v800_v63 = vld [vmem:[#allocation5 + $0x270] sm:$0xff] }
 0x7fd   :  { %v1760_v1 = vpop.f32.mrf.mxu0  ;;  %929 = vmatpush2.msra.mxu0 %v798_v62  ;;  %v1072_v62 = vld [vmem:[#allocation7 + $0x1b0] sm:$0xff] }
 0x7fe   :  { %v604_v3 = vmax.f32 %v601_v2, 0.0  ;;  %v795_v2 = vld [vmem:[#allocation5 + $0x248] sm:$0xff]  ;;  %v797_v1 = vld [vmem:[#allocation5 + $0x258] sm:$0xff] }
 0x7ff   :  { %930 = vmatprep.subr.mxu0 %v795_v2  ;;  %v1056_v2 = vld [vmem:[#allocation7 + $0x130] sm:$0xff] }
 0x800   :  { %714 = vmatmul.mubr.f32.vlgmr.msra.gmra.mxu1 %v604_v3  ;;  %v794_v3 = vld [vmem:[#allocation5 + $0x240] sm:$0xff] }
 0x801   :  { %944 = vmatpush1.msra.mxu1 %v784_v4  ;;  %v796_v4 = vld [vmem:[#allocation5 + $0x250] sm:$0xff]  ;;  %931 = vmatpush2.msra.mxu0 %v794_v3  ;;  %v1071_v3 = vld [vmem:[#allocation7 + $0x1a8] sm:$0xff] }
 0x802   :  { %945 = vmatprep.subr.mxu1 %v781_v5  ;;  %v791_v5 = vld [vmem:[#allocation5 + $0x228] sm:$0xff] }
 0x803   :  { %946 = vmatpush1.msra.mxu1 %v780_v6  ;;  %v793_v6 = vld [vmem:[#allocation5 + $0x238] sm:$0xff]  ;;  %932 = vmatprep.subr.mxu0 %v791_v5  ;;  %v1055_v5 = vld [vmem:[#allocation7 + $0x128] sm:$0xff] }
 0x804   :  { %947 = vmatprep.subr.mxu1 %v777_v9  ;;  %v790_v9 = vld [vmem:[#allocation5 + $0x220] sm:$0xff] }
 0x805   :  { %948 = vmatpush1.msra.mxu1 %v776_v10  ;;  %v792_v10 = vld [vmem:[#allocation5 + $0x230] sm:$0xff]  ;;  %933 = vmatpush2.msra.mxu0 %v790_v9  ;;  %v1070_v9 = vld [vmem:[#allocation7 + $0x1a0] sm:$0xff] }
 0x806   :  { %949 = vmatprep.subr.mxu1 %v773_v11  ;;  %v787_v11 = vld [vmem:[#allocation5 + $0x208] sm:$0xff] }
 0x807   :  { %950 = vmatpush1.msra.mxu1 %v772_v12  ;;  %v789_v12 = vld [vmem:[#allocation5 + $0x218] sm:$0xff]  ;;  %934 = vmatprep.subr.mxu0 %v787_v11  ;;  %v1054_v11 = vld [vmem:[#allocation7 + $0x120] sm:$0xff] }
 0x808   :  { %951 = vmatprep.subr.mxu1 %v769_v13  ;;  %v786_v13 = vld [vmem:[#allocation5 + $0x200] sm:$0xff] }
 0x809   :  { %952 = vmatpush1.msra.mxu1 %v768_v14  ;;  %v788_v14 = vld [vmem:[#allocation5 + $0x210] sm:$0xff]  ;;  %935 = vmatpush2.msra.mxu0 %v786_v13  ;;  %v1069_v13 = vld [vmem:[#allocation7 + $0x198] sm:$0xff] }
 0x80a   :  { %953 = vmatprep.subr.mxu1 %v765_v15  ;;  %v1049_v15 = vld [vmem:[#allocation7 + $0xf8] sm:$0xff] }
 0x80b   :  { %954 = vmatpush1.msra.mxu1 %v764_v8  ;;  %v1081_v8 = vld [vmem:[#allocation7 + $0x1f8] sm:$0xff]  ;;  %1520 = vmatprep.subr.mxu0 %v1049_v15 }
 0x80c   :  { %955 = vmatprep.subr.mxu1 %v761_v16  ;;  %v2384_v16 = vshrl.u32 %v198_v7, 7  ;;  %v1053_v15 = vld [vmem:[#allocation7 + $0x118] sm:$0xff] }
 0x80d   :  { %956 = vmatpush1.msra.mxu1 %v760_v17 }
 0x80e   :  { %957 = vmatprep.subr.mxu1 %v757_v18  ;;  %v641_v17 = vsub.s32 0, %v2384_v16  ;;  %v637_v18 = vld [vmem:[%s2506_s11] sm:$0x3] }
 0x80f   :  { %958 = vmatpush1.msra.mxu1 %v756_v19  ;;  %v645_v19 = vsub.s32 1, %v2384_v16 }
 0x810   :  { %959 = vmatprep.subr.mxu1 %v753_v20  ;;  %v642_v20 = vrot.slane %v637_v18, %v641_v17 }
 0x811   :  { %960 = vmatpush1.msra.mxu1 %v752_v21  ;;  %v646_v21 = vrot.slane %v637_v18, %v645_v19  ;;  %v1068_v18 = vld [vmem:[#allocation7 + $0x190] sm:$0xff] }
 0x812   :  { %961 = vmatprep.subr.mxu1 %v749_v22 }
 0x813   :  { %962 = vmatpush1.msra.mxu1 %v748_v23 }
 0x814   :  { %963 = vmatprep.subr.mxu1 %v745_v24 }
 0x815   :  { %964 = vmatpush1.msra.mxu1 %v744_v25 }
 0x816   :  { %965 = vmatprep.subr.mxu1 %v741_v26 }
 0x817   :  { %966 = vmatpush1.msra.mxu1 %v740_v27  ;;  %v1033_v27 = vld [vmem:[#allocation7 + $0x78] sm:$0xff] }
 0x818   :  { %967 = vmatprep.subr.mxu1 %v737_v28  ;;  %v1065_v28 = vld [vmem:[#allocation7 + $0x178] sm:$0xff] }
 0x819   :  { %968 = vmatpush1.msra.mxu1 %v736_v29  ;;  %v1048_v29 = vld [vmem:[#allocation7 + $0xf0] sm:$0xff] }
 0x81a   :  { %969 = vmatprep.subr.mxu1 %v733_v30  ;;  %v1080_v30 = vld [vmem:[#allocation7 + $0x1f0] sm:$0xff] }
 0x81b   :  { %970 = vmatpush1.msra.mxu1 %v732_v31  ;;  %v1032_v31 = vld [vmem:[#allocation7 + $0x70] sm:$0xff] }
 0x81c   :  { %971 = vmatprep.subr.mxu1 %v729_v32  ;;  %v1064_v32 = vld [vmem:[#allocation7 + $0x170] sm:$0xff] }
 0x81d   :  { %972 = vmatpush1.msra.mxu1 %v728_v33  ;;  %v1047_v33 = vld [vmem:[#allocation7 + $0xe8] sm:$0xff] }
 0x81e   :  { %973 = vmatprep.subr.mxu1 %v725_v34  ;;  %v1079_v34 = vld [vmem:[#allocation7 + $0x1e8] sm:$0xff] }
 0x81f   :  { %974 = vmatpush1.msra.mxu1 %v724_v35  ;;  %v1031_v35 = vld [vmem:[#allocation7 + $0x68] sm:$0xff] }
 0x820   :  { %975 = vmatprep.subr.mxu1 %v849_v36  ;;  %v1063_v36 = vld [vmem:[#allocation7 + $0x168] sm:$0xff] }
 0x821   :  { %976 = vmatpush2.msra.mxu1 %v848_v37  ;;  %v1046_v37 = vld [vmem:[#allocation7 + $0xe0] sm:$0xff] }
 0x822   :  { %977 = vmatprep.subr.mxu1 %v845_v38  ;;  %v1078_v38 = vld [vmem:[#allocation7 + $0x1e0] sm:$0xff] }
 0x823   :  { %978 = vmatpush2.msra.mxu1 %v844_v39  ;;  %v1030_v39 = vld [vmem:[#allocation7 + $0x60] sm:$0xff] }
 0x824   :  { %979 = vmatprep.subr.mxu1 %v841_v40  ;;  %v1062_v40 = vld [vmem:[#allocation7 + $0x160] sm:$0xff] }
 0x825   :  { %980 = vmatpush2.msra.mxu1 %v840_v41  ;;  %v1045_v41 = vld [vmem:[#allocation7 + $0xd8] sm:$0xff] }
 0x826   :  { %981 = vmatprep.subr.mxu1 %v837_v42  ;;  %v1077_v42 = vld [vmem:[#allocation7 + $0x1d8] sm:$0xff] }
 0x827   :  { %982 = vmatpush2.msra.mxu1 %v836_v43  ;;  %v1029_v43 = vld [vmem:[#allocation7 + $0x58] sm:$0xff] }
 0x828   :  { %983 = vmatprep.subr.mxu1 %v833_v44  ;;  %v1061_v44 = vld [vmem:[#allocation7 + $0x158] sm:$0xff] }
 0x829   :  { %984 = vmatpush2.msra.mxu1 %v832_v45  ;;  %v1044_v45 = vld [vmem:[#allocation7 + $0xd0] sm:$0xff] }
 0x82a   :  { %985 = vmatprep.subr.mxu1 %v829_v46  ;;  %v1076_v46 = vld [vmem:[#allocation7 + $0x1d0] sm:$0xff] }
 0x82b   :  { %986 = vmatpush2.msra.mxu1 %v828_v47  ;;  %v1028_v47 = vld [vmem:[#allocation7 + $0x50] sm:$0xff] }
 0x82c   :  { %987 = vmatprep.subr.mxu1 %v825_v48  ;;  %v1060_v48 = vld [vmem:[#allocation7 + $0x150] sm:$0xff] }
 0x82d   :  { %988 = vmatpush2.msra.mxu1 %v824_v49  ;;  %v1043_v49 = vld [vmem:[#allocation7 + $0xc8] sm:$0xff] }
 0x82e   :  { %989 = vmatprep.subr.mxu1 %v821_v50  ;;  %v1075_v50 = vld [vmem:[#allocation7 + $0x1c8] sm:$0xff] }
 0x82f   :  { %990 = vmatpush2.msra.mxu1 %v820_v51  ;;  %v1027_v51 = vld [vmem:[#allocation7 + $0x48] sm:$0xff] }
 0x830   :  { %991 = vmatprep.subr.mxu1 %v817_v52  ;;  %v1059_v52 = vld [vmem:[#allocation7 + $0x148] sm:$0xff] }
 0x831   :  { %992 = vmatpush2.msra.mxu1 %v816_v53  ;;  %v1042_v53 = vld [vmem:[#allocation7 + $0xc0] sm:$0xff] }
 0x832   :  { %993 = vmatprep.subr.mxu1 %v813_v54  ;;  %v1074_v54 = vld [vmem:[#allocation7 + $0x1c0] sm:$0xff] }
 0x833   :  { %994 = vmatpush2.msra.mxu1 %v812_v55  ;;  %v1026_v55 = vld [vmem:[#allocation7 + $0x40] sm:$0xff] }
 0x834   :  { %995 = vmatprep.subr.mxu1 %v809_v56  ;;  %v1058_v56 = vld [vmem:[#allocation7 + $0x140] sm:$0xff] }
 0x835   :  { %996 = vmatpush2.msra.mxu1 %v808_v57  ;;  %v1041_v57 = vld [vmem:[#allocation7 + $0xb8] sm:$0xff] }
 0x836   :  { %997 = vmatprep.subr.mxu1 %v805_v58  ;;  %v1073_v58 = vld [vmem:[#allocation7 + $0x1b8] sm:$0xff] }
 0x837   :  { %998 = vmatpush2.msra.mxu1 %v804_v59  ;;  %v1025_v59 = vld [vmem:[#allocation7 + $0x38] sm:$0xff] }
 0x838   :  { %999 = vmatprep.subr.mxu1 %v801_v61  ;;  %v1040_v61 = vld [vmem:[#allocation7 + $0xb0] sm:$0xff] }
 0x839   :  { %1000 = vmatpush2.msra.mxu1 %v800_v63  ;;  %v1024_v63 = vld [vmem:[#allocation7 + $0x30] sm:$0xff] }
 0x83a   :  { %1001 = vmatprep.subr.mxu1 %v797_v1  ;;  %v1039_v1 = vld [vmem:[#allocation7 + $0xa8] sm:$0xff] }
 0x83b   :  { %1002 = vmatpush2.msra.mxu1 %v796_v4  ;;  %v1023_v4 = vld [vmem:[#allocation7 + $0x28] sm:$0xff] }
 0x83c   :  { %1003 = vmatprep.subr.mxu1 %v793_v6  ;;  %v1038_v6 = vld [vmem:[#allocation7 + $0xa0] sm:$0xff] }
 0x83d   :  { %1004 = vmatpush2.msra.mxu1 %v792_v10  ;;  %v1022_v10 = vld [vmem:[#allocation7 + $0x20] sm:$0xff] }
 0x83e   :  { %1005 = vmatprep.subr.mxu1 %v789_v12  ;;  %v1037_v12 = vld [vmem:[#allocation7 + $0x98] sm:$0xff] }
 0x83f   :  { %1006 = vmatpush2.msra.mxu1 %v788_v14  ;;  %v1021_v14 = vld [vmem:[#allocation7 + $0x18] sm:$0xff] }
 0x840   :  { %1555 = vmatprep.subr.mxu1 %v1081_v8  ;;  %v1036_v8 = vld [vmem:[#allocation7 + $0x90] sm:$0xff] }
 0x8c0   :  { %v715_v22 = vpop.f32.mrf.mxu1 }
 0x8c1   :  { %v716_v23 = vadd.f32 %v715_v22, %v642_v20  ;;  %v1020_v20 = vld [vmem:[#allocation7 + $0x10] sm:$0xff]  ;;  %v1035_v22 = vld [vmem:[#allocation7 + $0x88] sm:$0xff] }
 0x8c2   :  { %v717_v24 = vpop.f32.mrf.mxu1 }
 0x8c3   :  { %v718_v25 = vadd.f32 %v717_v24, %v646_v21  ;;  %v720_v26 = vmax.f32 %v716_v23, 0.0  ;;  %v1052_v21 = vld [vmem:[#allocation7 + $0x110] sm:$0xff]  ;;  %v1067_v23 = vld [vmem:[#allocation7 + $0x188] sm:$0xff] }
 0x8c4   :  { %v1019_v24 = vld [vmem:[#allocation7 + $0x8] sm:$0xff] }
 0x8c5   :  { %v721_v7 = vmax.f32 %v718_v25, 0.0  ;;  %v1051_v25 = vld [vmem:[#allocation7 + $0x108] sm:$0xff] }
 0x8c7   :  { %936 = vmatprep.mubr.f32.mxu0 %v721_v7  ;;  %1007 = vmatprep.mubr.f32.mxu1 %v721_v7  ;;  %v1034_v7 = vld [vmem:[#allocation7 + $0x80] sm:$0xff] }
 0x8c8   :  { %937 = vmatmul.mubr.f32.vlgmr.msra.gmra.mxu0 %v720_v26  ;;  %1008 = vmatmul.mubr.f32.vlgmr.msra.gmra.mxu1 %v720_v26  ;;  %v1066_v26 = vld [vmem:[#allocation7 + $0x180] sm:$0xff] }
 0x8c9   :  { %1521 = vmatpush3.msra.mxu0 %v1033_v27  ;;  %1556 = vmatpush3.msra.mxu1 %v1065_v28  ;;  %v1018_v27 = vld [vmem:[#allocation7] sm:$0xff] }
 0x8ca   :  { %1522 = vmatprep.subr.mxu0 %v1048_v29  ;;  %1557 = vmatprep.subr.mxu1 %v1080_v30  ;;  %v1050_v28 = vld [vmem:[#allocation7 + $0x100] sm:$0xff]  ;;  %v862_v29 = vsub.s32 2, %v2384_v16 }
 0x8cb   :  { %1523 = vmatpush3.msra.mxu0 %v1032_v31  ;;  %1558 = vmatpush3.msra.mxu1 %v1064_v32  ;;  %v850_v30 = vld [vmem:[%s2507_s12] sm:$0xf]  ;;  %v866_v31 = vsub.s32 3, %v2384_v16  ;;  %v1244_v16 = vld [vmem:[%s2503_s8 + $0x70] sm:$0xff] }
 0x8cc   :  { %1524 = vmatprep.subr.mxu0 %v1047_v33  ;;  %1559 = vmatprep.subr.mxu1 %v1079_v34  ;;  %v855_v32 = vrot.slane %v850_v30, %v641_v17  ;;  %v863_v33 = vrot.slane %v850_v30, %v862_v29  ;;  %v859_v34 = vrot.slane %v850_v30, %v645_v19  ;;  %v1245_v17 = vld [vmem:[%s2503_s8 + $0x78] sm:$0xff]  ;;  %v1243_v19 = vld [vmem:[%s2503_s8 + $0x68] sm:$0xff] }
 0x8cd   :  { %1525 = vmatpush3.msra.mxu0 %v1031_v35  ;;  %1560 = vmatpush3.msra.mxu1 %v1063_v36  ;;  %v867_v35 = vrot.slane %v850_v30, %v866_v31 }
 0x8ce   :  { %1526 = vmatprep.subr.mxu0 %v1046_v37  ;;  %1561 = vmatprep.subr.mxu1 %v1078_v38 }
 0x8cf   :  { %1527 = vmatpush3.msra.mxu0 %v1030_v39  ;;  %1562 = vmatpush3.msra.mxu1 %v1062_v40 }
 0x8d0   :  { %1528 = vmatprep.subr.mxu0 %v1045_v41  ;;  %1563 = vmatprep.subr.mxu1 %v1077_v42 }
 0x8d1   :  { %1529 = vmatpush3.msra.mxu0 %v1029_v43  ;;  %1564 = vmatpush3.msra.mxu1 %v1061_v44 }
 0x8d2   :  { %1530 = vmatprep.subr.mxu0 %v1044_v45  ;;  %1565 = vmatprep.subr.mxu1 %v1076_v46 }
 0x8d3   :  { %1531 = vmatpush3.msra.mxu0 %v1028_v47  ;;  %1566 = vmatpush3.msra.mxu1 %v1060_v48  ;;  %v1242_v48 = vld [vmem:[%s2503_s8 + $0x60] sm:$0xff] }
 0x8d4   :  { %1532 = vmatprep.subr.mxu0 %v1043_v49  ;;  %1567 = vmatprep.subr.mxu1 %v1075_v50  ;;  %v1241_v49 = vld [vmem:[%s2503_s8 + $0x58] sm:$0xff]  ;;  %v1240_v50 = vld [vmem:[%s2503_s8 + $0x50] sm:$0xff] }
 0x8d5   :  { %1533 = vmatpush3.msra.mxu0 %v1027_v51  ;;  %1568 = vmatpush3.msra.mxu1 %v1059_v52  ;;  %v1239_v51 = vld [vmem:[%s2503_s8 + $0x48] sm:$0xff]  ;;  %v1238_v52 = vld [vmem:[%s2503_s8 + $0x40] sm:$0xff] }
 0x8d6   :  { %1534 = vmatprep.subr.mxu0 %v1042_v53  ;;  %1569 = vmatprep.subr.mxu1 %v1074_v54  ;;  %v1237_v53 = vld [vmem:[%s2503_s8 + $0x38] sm:$0xff]  ;;  %v1236_v54 = vld [vmem:[%s2503_s8 + $0x30] sm:$0xff] }
 0x8d7   :  { %1535 = vmatpush3.msra.mxu0 %v1026_v55  ;;  %1570 = vmatpush3.msra.mxu1 %v1058_v56  ;;  %v1235_v55 = vld [vmem:[%s2503_s8 + $0x28] sm:$0xff]  ;;  %v1234_v56 = vld [vmem:[%s2503_s8 + $0x20] sm:$0xff] }
 0x8d8   :  { %1536 = vmatprep.subr.mxu0 %v1041_v57  ;;  %1571 = vmatprep.subr.mxu1 %v1073_v58  ;;  %v1233_v57 = vld [vmem:[%s2503_s8 + $0x18] sm:$0xff]  ;;  %v1232_v58 = vld [vmem:[%s2503_s8 + $0x10] sm:$0xff] }
 0x8d9   :  { %1537 = vmatpush3.msra.mxu0 %v1025_v59  ;;  %1572 = vmatpush3.msra.mxu1 %v1057_v60  ;;  %v1231_v59 = vld [vmem:[%s2503_s8 + $0x8] sm:$0xff]  ;;  %v1230_v60 = vld [vmem:[%s2503_s8] sm:$0xff] }
 0x8da   :  { %1538 = vmatprep.subr.mxu0 %v1040_v61  ;;  %1573 = vmatprep.subr.mxu1 %v1072_v62  ;;  %v1331_v61 = vld [vmem:[#allocation8 + $0x38] sm:$0xff]  ;;  %v1330_v62 = vld [vmem:[#allocation8 + $0x30] sm:$0xff] }
 0x8db   :  { %1539 = vmatpush3.msra.mxu0 %v1024_v63  ;;  %1574 = vmatpush3.msra.mxu1 %v1056_v2  ;;  %v1329_v63 = vld [vmem:[#allocation8 + $0x28] sm:$0xff]  ;;  %v1328_v2 = vld [vmem:[#allocation8 + $0x20] sm:$0xff] }
 0x8dc   :  { %1540 = vmatprep.subr.mxu0 %v1039_v1  ;;  %1575 = vmatprep.subr.mxu1 %v1071_v3  ;;  %v1327_v1 = vld [vmem:[#allocation8 + $0x18] sm:$0xff] }
 0x8dd   :  { %1541 = vmatpush3.msra.mxu0 %v1023_v4  ;;  %1576 = vmatpush3.msra.mxu1 %v1055_v5  ;;  %v1446_v5 = vld [vmem:[%s2508_s13] ss:$0 sm:$0xff] }
 0x8de   :  { %1542 = vmatprep.subr.mxu0 %v1038_v6  ;;  %1577 = vmatprep.subr.mxu1 %v1070_v9 }
 0x8df   :  { %1543 = vmatpush3.msra.mxu0 %v1022_v10  ;;  %1578 = vmatpush3.msra.mxu1 %v1054_v11 }
 0x8e0   :  { %1544 = vmatprep.subr.mxu0 %v1037_v12  ;;  %1579 = vmatprep.subr.mxu1 %v1069_v13 }
 0x8e1   :  { %1545 = vmatpush3.msra.mxu0 %v1021_v14  ;;  %1580 = vmatpush3.msra.mxu1 %v1053_v15  ;;  %v1326_v15 = vld [vmem:[#allocation8 + $0x10] sm:$0xff] }
 0x8e2   :  { %1546 = vmatprep.subr.mxu0 %v1036_v8  ;;  %1581 = vmatprep.subr.mxu1 %v1068_v18  ;;  %v1325_v8 = vld [vmem:[#allocation8 + $0x8] sm:$0xff]  ;;  %v1324_v18 = vld [vmem:[#allocation8] sm:$0xff] }
 0x8e3   :  { %1547 = vmatpush3.msra.mxu0 %v1020_v20  ;;  %1582 = vmatpush3.msra.mxu1 %v1052_v21  ;;  %v1447_v20 = vld [vmem:[%s2509_s14] ss:$0 sm:$0xff] }
 0x8e4   :  { %1548 = vmatprep.subr.mxu0 %v1035_v22  ;;  %1583 = vmatprep.subr.mxu1 %v1067_v23 }
 0x8e5   :  { %1549 = vmatpush3.msra.mxu0 %v1019_v24  ;;  %1584 = vmatpush3.msra.mxu1 %v1051_v25 }
 0x8e6   :  { %1550 = vmatprep.subr.mxu0 %v1034_v7  ;;  %1585 = vmatprep.subr.mxu1 %v1066_v26 }
 0x8e7   :  { %1551 = vmatpush3.msra.mxu0 %v1018_v27  ;;  %1586 = vmatpush3.msra.mxu1 %v1050_v28 }
 0x8e8   :  { %1761 = vmatprep.subr.mxu0 %v1946_v0  ;;  %1796 = vmatprep.subr.mxu1 %v1946_v0 }
 0x988   :  { %v938_v36 = vpop.f32.mrf.mxu0  ;;  %v1009_v37 = vpop.f32.mrf.mxu1 }
 0x989   :  { %v939_v38 = vadd.f32 %v938_v36, %v855_v32  ;;  %v1010_v39 = vadd.f32 %v1009_v37, %v863_v33 }
 0x98a   :  { %v940_v40 = vpop.f32.mrf.mxu0  ;;  %v1011_v41 = vpop.f32.mrf.mxu1 }
 0x98b   :  { %v941_v42 = vadd.f32 %v940_v40, %v859_v34  ;;  %v1012_v43 = vadd.f32 %v1011_v41, %v867_v35  ;;  %v1014_v46 = vmax.f32 %v939_v38, 0.0  ;;  %v1016_v47 = vmax.f32 %v1010_v39, 0.0 }
 0x98d   :  { %v1015_v44 = vmax.f32 %v941_v42, 0.0  ;;  %v1017_v45 = vmax.f32 %v1012_v43, 0.0 }
 0x98f   :  { %1153 = vmatprep.mubr.f32.mxu0 %v1015_v44  ;;  %1223 = vmatprep.mubr.f32.mxu1 %v1017_v45 }
 0x990   :  { %1154 = vmatmul.mubr.f32.vlgmr.msra.gmra.mxu0 %v1014_v46  ;;  %1224 = vmatmul.mubr.f32.vlgmr.msra.gmra.mxu1 %v1016_v47 }
 0x991   :  { %1762 = vmatpush3.msra.mxu0 %v1245_v17  ;;  %1793 = vmatprep.mubr.msk.f32.mxu0 %vm1947_vm0, %v1946_v0 }
 0x992   :  { %1763 = vmatprep.subr.mxu0 %v1946_v0  ;;  %1812 = vmatprep.mubr.msk.f32.mxu1 %vm1947_vm0, %v1946_v0 }
 0x993   :  { %1764 = vmatpush3.msra.mxu0 %v1244_v16  ;;  %1797 = vmatpush3.msra.mxu1 %v1331_v61 }
 0x994   :  { %1765 = vmatprep.subr.mxu0 %v1946_v0  ;;  %1798 = vmatprep.subr.mxu1 %v1946_v0 }
 0x995   :  { %1766 = vmatpush3.msra.mxu0 %v1243_v19  ;;  %1799 = vmatpush3.msra.mxu1 %v1330_v62 }
 0x996   :  { %1767 = vmatprep.subr.mxu0 %v1946_v0  ;;  %1800 = vmatprep.subr.mxu1 %v1946_v0 }
 0x997   :  { %1768 = vmatpush3.msra.mxu0 %v1242_v48  ;;  %1801 = vmatpush3.msra.mxu1 %v1329_v63 }
 0x998   :  { %1769 = vmatprep.subr.mxu0 %v1946_v0  ;;  %1802 = vmatprep.subr.mxu1 %v1946_v0 }
 0x999   :  { %1770 = vmatpush3.msra.mxu0 %v1241_v49  ;;  %1803 = vmatpush3.msra.mxu1 %v1328_v2 }
 0x99a   :  { %1771 = vmatprep.subr.mxu0 %v1946_v0  ;;  %1804 = vmatprep.subr.mxu1 %v1946_v0 }
 0x99b   :  { %1772 = vmatpush3.msra.mxu0 %v1240_v50  ;;  %1805 = vmatpush3.msra.mxu1 %v1327_v1 }
 0x99c   :  { %1773 = vmatprep.subr.mxu0 %v1946_v0  ;;  %1806 = vmatprep.subr.mxu1 %v1946_v0 }
 0x99d   :  { %1774 = vmatpush3.msra.mxu0 %v1239_v51  ;;  %1807 = vmatpush3.msra.mxu1 %v1326_v15 }
 0x99e   :  { %1775 = vmatprep.subr.mxu0 %v1946_v0  ;;  %1808 = vmatprep.subr.mxu1 %v1946_v0 }
 0x99f   :  { %1776 = vmatpush3.msra.mxu0 %v1238_v52  ;;  %1809 = vmatpush3.msra.mxu1 %v1325_v8 }
 0x9a0   :  { %1777 = vmatprep.subr.mxu0 %v1946_v0  ;;  %1810 = vmatprep.subr.mxu1 %v1946_v0 }
 0x9a1   :  { %1778 = vmatpush3.msra.mxu0 %v1237_v53  ;;  %1811 = vmatpush3.msra.mxu1 %v1324_v18 }
 0x9a2   :  { %1779 = vmatprep.subr.mxu0 %v1946_v0 }
 0x9a3   :  { %1780 = vmatpush3.msra.mxu0 %v1236_v54 }
 0x9a4   :  { %1781 = vmatprep.subr.mxu0 %v1946_v0 }
 0x9a5   :  { %1782 = vmatpush3.msra.mxu0 %v1235_v55 }
 0x9a6   :  { %1783 = vmatprep.subr.mxu0 %v1946_v0 }
 0x9a7   :  { %1784 = vmatpush3.msra.mxu0 %v1234_v56 }
 0x9a8   :  { %1785 = vmatprep.subr.mxu0 %v1946_v0 }
 0x9a9   :  { %1786 = vmatpush3.msra.mxu0 %v1233_v57 }
 0x9aa   :  { %1787 = vmatprep.subr.mxu0 %v1946_v0 }
 0x9ab   :  { %1788 = vmatpush3.msra.mxu0 %v1232_v58 }
 0x9ac   :  { %1789 = vmatprep.subr.mxu0 %v1946_v0 }
 0x9ad   :  { %1790 = vmatpush3.msra.mxu0 %v1231_v59 }
 0x9ae   :  { %1791 = vmatprep.subr.mxu0 %v1946_v0 }
 0x9af   :  { %1792 = vmatpush3.msra.mxu0 %v1230_v60 }
 0xa50   :  { %v1552_v3 = vpop.f32.mrf.mxu0  ;;  %v1587_v4 = vpop.f32.mrf.mxu1 }
 0xa52   :  { %v1553_v6 = vpop.f32.mrf.mxu0  ;;  %v1588_v9 = vpop.f32.mrf.mxu1 }
 0xa53   :  { %v1554_v10 = vadd.f32 %v1553_v6, %v1552_v3  ;;  %v1589_v12 = vadd.f32 %v1588_v9, %v1587_v4 }
 0xa55   :  { %v1156_v11 = vadd.f32 %v1554_v10, %v1446_v5 }
 0xa57   :  { %v1226_v13 = vadd.f32 %v1589_v12, %v1156_v11 }
 0xa59   :  { %v1229_v14 = vmax.f32 %v1226_v13, 0.0 }
 0xa5b   :  { %1794 = vmatmul.mubr.f32.vlgmr.msra.gmra.mxu0 %v1229_v14 }
 0xb1b   :  { %v1319_v21 = vpop.f32.mrf.mxu0 }
 0xb1c   :  { %v1320_v22 = vadd.f32 %v1447_v20, %v1319_v21 }
 0xb1d   :  { %v1795_v23 = vpop.f32.mrf.mxu0 }
 0xb1e   :  { %v1323_v24 = vmax.f32 %v1320_v22, 0.0 }
 0xb20   :  { %1813 = vmatmul.mubr.msk.f32.vlgmr.msra.gmra.mxu1 %vm1339_vm15, %v1323_v24 }
 0xb21   :  { %1921 = shalt.err (!%p1918_p10)
}
 0xb22   :  { %1425 = dma.vmem_to_hbm [thread:$0]  %s1423_s27, 128, %s2512_s17, [#allocation4]   ;;  %v1448_v0 = vld [vmem:[%s2510_s15] ss:$0 sm:$0xff] }
 0xbe0   :  { %v1409_v25 = vpop.f32.mrf.mxu1 }
 0xbe1   :  { %v1410_v7 = vadd.f32 %v1448_v0, %v1409_v25 }
 0xbe2   :  { %v1814_v26 = vpop.f32.mrf.mxu1 }
 0xbe3   :  { %1413 = vst [vmem:[%s2511_s16] sm:$0xff] %v1410_v7 }
 0xbe4   :  { %1936 = dma.done.wait [#allocation4], 128  }
 0xbe5   :  { %1937 = vsyncadd [#allocation4], 4294967168 }
 0xbe6   :  { %1431 = vsyncpa [#allocation3], 1 }
 0xbe7   :  { %1432 = vsyncpa [#allocation6], 1 }
 0xbe8   :  { %1433 = vsyncpa [#allocation9], 1 }
 0xbe9   :  { %1434 = vsyncpa [#allocation4], 1 }

</bundles_post_ra>
